<compile_context>
chip_gen: v6e
topology: v6e:2x2x1
jax: 0.10.0
libtpu: 0.0.40
codegen_flags: <defaults>
</compile_context>

<pallas_src>
import functools
import math

import jax
import jax.numpy as jnp
from jax.experimental import pallas as pl
from jax.experimental.pallas import tpu as pltpu

EPS = 1e-5


# ----------------------------------------------------------------------------
# Fused Pallas kernel: all branches, all layers, all residuals in one call
# ----------------------------------------------------------------------------
def _fused_gcn_kernel(x_ref, w1_ref, att1_ref, s1_ref, t1_ref,
                      wb_ref, attb_ref, sb_ref, tb_ref,
                      w7_ref, att7_ref, b7_ref, o_ref,
                      *, n_sep, num_stage):
    # Shapes (everything VMEM-resident, no grid):
    #   x_ref    (n_sep, N, B*Fin)        inputs, batch folded onto lanes
    #   w1_ref   (n_sep, B*Fin, B*H)      block-diagonal kron(I_B, W1)
    #   att1_ref (n_sep, N, N)
    #   s1_ref   (n_sep, N, B*H)          BN1 scale (batch-tiled)
    #   t1_ref   (n_sep, N, B*H)          BN1 shift (gc1 bias folded in)
    #   wb_ref   (n_sep*num_stage*2, B*H, B*H)
    #   attb_ref (n_sep*num_stage*2, N, N)
    #   sb_ref   (n_sep*num_stage*2, N, B*H)
    #   tb_ref   (n_sep*num_stage*2, N, B*H)
    #   w7_ref   (n_sep, B*H, B*Fin)
    #   att7_ref (n_sep, N, N)
    #   b7_ref   (n_sep, 1, B*Fin)
    #   o_ref    (n_sep, N, B*Fin)

    def graph_conv(y, w, att):
        support = jnp.dot(y, w, preferred_element_type=jnp.float32)
        return jnp.dot(att, support, preferred_element_type=jnp.float32)

    for br in range(n_sep):                       # static unroll over branches
        x_b = x_ref[br]                           # (N, B*Fin)

        # gc1 -> BN1 (folded affine, bias included) -> tanh
        # TODO(synk): nn.Dropout has no deterministic Pallas equivalent;
        # identity (eval mode).
        y = graph_conv(x_b, w1_ref[br], att1_ref[br])
        y = jnp.tanh(y * s1_ref[br] + t1_ref[br])

        # GC_Block residual stages
        for s in range(num_stage):
            y_in = y
            for k in range(2):
                li = (br * num_stage + s) * 2 + k
                y = graph_conv(y, wb_ref[li], attb_ref[li])
                y = jnp.tanh(y * sb_ref[li] + tb_ref[li])
            y = y + y_in

        # gc7 (bias, no BN, no activation), GCN residual (+x) and the outer
        # GCN_Block_NonRes residual (x_ + y)  ==>  gc7_out + 2*x
        y = graph_conv(y, w7_ref[br], att7_ref[br]) + b7_ref[br]
        y = y + 2.0 * x_b

        o_ref[br] = y.astype(o_ref.dtype)


# ----------------------------------------------------------------------------
# Host wrapper: parameter folding / stacking (tiny arrays) + pallas_call
# ----------------------------------------------------------------------------
def bn_scale_shift(bn, node_n, feat):
    """Fold eval-mode BatchNorm1d into per-element scale/shift of shape (N, F)."""
    scale = bn["gamma"] / jnp.sqrt(bn["running_var"] + EPS)
    shift = bn["beta"] - bn["running_mean"] * scale
    return scale.reshape(node_n, feat), shift.reshape(node_n, feat)


def gcn_block_nonres_forward(all_params, x, node_n, hidden_feature):
    """x: (n_sep, B, node_n, in_f) -> (B, node_n, n_sep*in_f)."""
    n_sep, B, N, Fin = x.shape
    H = hidden_feature
    num_stage = len(all_params[0]["gcbs"])
    eyeB = jnp.eye(B, dtype=jnp.float32)

    def fold_bn(gc, bn):
        scale, shift = bn_scale_shift(bn, node_n, H)            # (N, H)
        shift = shift + scale * gc["bias"][None, :]             # fold GC bias
        return jnp.tile(scale, (1, B)), jnp.tile(shift, (1, B)) # (N, B*H)

    # --- stack / fold parameters (host-side layout plumbing) ---
    w1 = jnp.stack([jnp.kron(eyeB, p["gc1"]["weight"]) for p in all_params])
    att1 = jnp.stack([p["gc1"]["att"] for p in all_params])
    s1t1 = [fold_bn(p["gc1"], p["bn1"]) for p in all_params]
    s1 = jnp.stack([s for s, _ in s1t1])
    t1 = jnp.stack([t for _, t in s1t1])

    wb_l, attb_l, sb_l, tb_l = [], [], [], []
    for p in all_params:
        for blk in p["gcbs"]:
            for gc_name, bn_name in (("gc1", "bn1"), ("gc2", "bn2")):
                gc, bn = blk[gc_name], blk[bn_name]
                sc, sh = fold_bn(gc, bn)
                wb_l.append(jnp.kron(eyeB, gc["weight"]))
                attb_l.append(gc["att"])
                sb_l.append(sc)
                tb_l.append(sh)
    if wb_l:
        wb, attb = jnp.stack(wb_l), jnp.stack(attb_l)
        sb, tb = jnp.stack(sb_l), jnp.stack(tb_l)
    else:  # num_stage == 0: unused placeholders
        wb = jnp.zeros((1, B * H, B * H), jnp.float32)
        attb = jnp.zeros((1, N, N), jnp.float32)
        sb = jnp.zeros((1, N, B * H), jnp.float32)
        tb = jnp.zeros((1, N, B * H), jnp.float32)

    w7 = jnp.stack([jnp.kron(eyeB, p["gc7"]["weight"]) for p in all_params])
    att7 = jnp.stack([p["gc7"]["att"] for p in all_params])
    b7 = jnp.stack([jnp.tile(p["gc7"]["bias"], B)[None, :] for p in all_params])

    # x: (S, B, N, Fin) -> (S, N, B*Fin)   (batch folded onto the lane axis)
    x_t = jnp.transpose(x, (0, 2, 1, 3)).reshape(n_sep, N, B * Fin)

    # Advisory cost hint for the XLA scheduler.
    dims = [(Fin, H)] + [(H, H)] * (2 * num_stage) + [(H, Fin)]
    flops = n_sep * sum(2 * N * (B * fi) * (B * fo) + 2 * N * N * (B * fo)
                        for fi, fo in dims)
    transc = n_sep * (1 + 2 * num_stage) * N * B * H
    operands = (x_t, w1, att1, s1, t1, wb, attb, sb, tb, w7, att7, b7)
    bytes_acc = 4 * (sum(int(a.size) for a in operands) + n_sep * N * B * Fin)

    vmem = pl.BlockSpec(memory_space=pltpu.MemorySpace.VMEM)
    kernel = functools.partial(_fused_gcn_kernel, n_sep=n_sep,
                               num_stage=num_stage)
    out_slab = pl.pallas_call(
        kernel,
        out_shape=jax.ShapeDtypeStruct((n_sep, N, B * Fin), jnp.float32),
        in_specs=[vmem] * len(operands),
        out_specs=vmem,
        cost_estimate=pl.CostEstimate(flops=int(flops),
                                      transcendentals=int(transc),
                                      bytes_accessed=int(bytes_acc)),
    )(*operands)

    # (S, N, [b, f]) -> (B, N, [s, f])  == torch.cat over branches on dim=-1
    out = out_slab.reshape(n_sep, N, B, Fin).transpose(2, 1, 0, 3)
    return out.reshape(B, N, n_sep * Fin)


# ----------------------------------------------------------------------------
# Parameter construction (deterministic, mirrors the PyTorch __init__ shapes)
# ----------------------------------------------------------------------------
def make_graph_conv(key, in_f, out_f, node_n):
    stdv = 1.0 / math.sqrt(out_f)
    k1, k2, k3 = jax.random.split(key, 3)
    return {
        "weight": jax.random.uniform(k1, (in_f, out_f), jnp.float32, -stdv, stdv),
        "att": jax.random.uniform(k2, (node_n, node_n), jnp.float32, -stdv, stdv),
        "bias": jax.random.uniform(k3, (out_f,), jnp.float32, -stdv, stdv),
    }


def make_batchnorm(num_features):
    # PyTorch BatchNorm1d defaults: gamma=1, beta=0, running_mean=0, running_var=1
    return {
        "gamma": jnp.ones((num_features,), jnp.float32),
        "beta": jnp.zeros((num_features,), jnp.float32),
        "running_mean": jnp.zeros((num_features,), jnp.float32),
        "running_var": jnp.ones((num_features,), jnp.float32),
    }


def make_gcn(key, input_feature, hidden_feature, num_stage, node_n):
    keys = jax.random.split(key, 2 + 2 * num_stage)
    params = {
        "gc1": make_graph_conv(keys[0], input_feature, hidden_feature, node_n),
        "bn1": make_batchnorm(node_n * hidden_feature),
        "gcbs": [],
        "gc7": make_graph_conv(keys[1], hidden_feature, input_feature, node_n),
    }
    for i in range(num_stage):
        blk = {
            "gc1": make_graph_conv(keys[2 + 2 * i], hidden_feature, hidden_feature, node_n),
            "bn1": make_batchnorm(node_n * hidden_feature),
            "gc2": make_graph_conv(keys[3 + 2 * i], hidden_feature, hidden_feature, node_n),
            "bn2": make_batchnorm(node_n * hidden_feature),
        }
        params["gcbs"].append(blk)
    return params


# ----------------------------------------------------------------------------
# Pure-JAX reference (for correctness checking only)
# ----------------------------------------------------------------------------
def _gc_ref(x, gc, scale=None, shift=None, act=False):
    out = jnp.einsum("nm,bmf->bnf", gc["att"],
                     jnp.einsum("bni,io->bno", x, gc["weight"])) + gc["bias"]
    if scale is not None:
        out = out * scale[None] + shift[None]
    if act:
        out = jnp.tanh(out)
    return out


def _gcn_ref(p, x, node_n, hidden):
    s1, t1 = bn_scale_shift(p["bn1"], node_n, hidden)
    y = _gc_ref(x, p["gc1"], s1, t1, act=True)
    for blk in p["gcbs"]:
        y_in = y
        sa, ta = bn_scale_shift(blk["bn1"], node_n, hidden)
        h = _gc_ref(y, blk["gc1"], sa, ta, act=True)
        sb, tb = bn_scale_shift(blk["bn2"], node_n, hidden)
        h = _gc_ref(h, blk["gc2"], sb, tb, act=True)
        y = h + y_in
    y = _gc_ref(y, p["gc7"])
    return y + x


def _ref_forward(all_params, x, node_n, hidden):
    ys = [_gcn_ref(p, x[i], node_n, hidden) for i, p in enumerate(all_params)]
    xs = [x[i] for i in range(x.shape[0])]
    return jnp.concatenate(xs, -1) + jnp.concatenate(ys, -1)


# ----------------------------------------------------------------------------
if __name__ == "__main__":
    # Small shapes consistent with the module's forward.
    n_separate = 2
    batch = 2
    node_n = 48
    input_feature = 16
    hidden_feature = 32
    num_stage = 2

    root = jax.random.PRNGKey(0)
    kx, kp = jax.random.split(root)

    # x is a stack of n_separate inputs, each (batch, node_n, input_feature)
    x = jax.random.normal(kx, (n_separate, batch, node_n, input_feature),
                          dtype=jnp.float32)

    pkeys = jax.random.split(kp, n_separate)
    all_params = [make_gcn(pkeys[i], input_feature, hidden_feature,
                           num_stage, node_n) for i in range(n_separate)]

    fwd = jax.jit(lambda params, xx: gcn_block_nonres_forward(
        params, xx, node_n, hidden_feature))
    out = jax.block_until_ready(fwd(all_params, x))

    ref = _ref_forward(all_params, x, node_n, hidden_feature)
    assert out.shape == (batch, node_n, n_separate * input_feature), out.shape
    assert jnp.allclose(out, ref, atol=1e-3, rtol=1e-3), "mismatch vs JAX reference"

    print("KERNEL_OK")
</pallas_src>

<mosaic_0001>
module attributes {stable_mosaic.version = 11 : i64} {
  func.func @_fused_gcn_kernel(%arg0: memref<2x48x32xf32, #tpu.memory_space<vmem>>, %arg1: memref<2x32x64xf32, #tpu.memory_space<vmem>>, %arg2: memref<2x48x48xf32, #tpu.memory_space<vmem>>, %arg3: memref<2x48x64xf32, #tpu.memory_space<vmem>>, %arg4: memref<2x48x64xf32, #tpu.memory_space<vmem>>, %arg5: memref<8x64x64xf32, #tpu.memory_space<vmem>>, %arg6: memref<8x48x48xf32, #tpu.memory_space<vmem>>, %arg7: memref<8x48x64xf32, #tpu.memory_space<vmem>>, %arg8: memref<8x48x64xf32, #tpu.memory_space<vmem>>, %arg9: memref<2x64x32xf32, #tpu.memory_space<vmem>>, %arg10: memref<2x48x48xf32, #tpu.memory_space<vmem>>, %arg11: memref<2x1x32xf32, #tpu.memory_space<vmem>>, %arg12: memref<2x48x32xf32, #tpu.memory_space<vmem>>) attributes {dimension_semantics = [], scalar_prefetch = 0 : i64, scratch_operands = 0 : i64, tpu.core_type = #tpu.core_type<tc>} {
    %c0 = arith.constant 0 : index
    %c0_0 = arith.constant 0 : index
    %c0_1 = arith.constant 0 : index
    %0 = vector.load %arg0[%c0, %c0_0, %c0_1] : memref<2x48x32xf32, #tpu.memory_space<vmem>>, vector<1x48x32xf32>
    %1 = vector.shape_cast %0 : vector<1x48x32xf32> to vector<48x32xf32>
    %c0_2 = arith.constant 0 : index
    %c0_3 = arith.constant 0 : index
    %c0_4 = arith.constant 0 : index
    %2 = vector.load %arg1[%c0_2, %c0_3, %c0_4] : memref<2x32x64xf32, #tpu.memory_space<vmem>>, vector<1x32x64xf32>
    %3 = vector.shape_cast %2 : vector<1x32x64xf32> to vector<32x64xf32>
    %c0_5 = arith.constant 0 : index
    %c0_6 = arith.constant 0 : index
    %c0_7 = arith.constant 0 : index
    %4 = vector.load %arg2[%c0_5, %c0_6, %c0_7] : memref<2x48x48xf32, #tpu.memory_space<vmem>>, vector<1x48x48xf32>
    %5 = vector.shape_cast %4 : vector<1x48x48xf32> to vector<48x48xf32>
    %cst = arith.constant dense<0.000000e+00> : vector<48x64xf32>
    %6 = tpu.matmul %1, %3, %cst {dimension_numbers = #tpu.dot_dimension_numbers<[1], [0], [0], [1], [0, 0, 1, 1], [], []>} : vector<48x32xf32>, vector<32x64xf32>, vector<48x64xf32> -> vector<48x64xf32>
    %cst_8 = arith.constant dense<0.000000e+00> : vector<48x64xf32>
    %7 = tpu.matmul %5, %6, %cst_8 {dimension_numbers = #tpu.dot_dimension_numbers<[1], [0], [0], [1], [0, 0, 1, 1], [], []>} : vector<48x48xf32>, vector<48x64xf32>, vector<48x64xf32> -> vector<48x64xf32>
    %c0_9 = arith.constant 0 : index
    %c0_10 = arith.constant 0 : index
    %c0_11 = arith.constant 0 : index
    %8 = vector.load %arg3[%c0_9, %c0_10, %c0_11] : memref<2x48x64xf32, #tpu.memory_space<vmem>>, vector<1x48x64xf32>
    %9 = vector.shape_cast %8 : vector<1x48x64xf32> to vector<48x64xf32>
    %10 = arith.mulf %7, %9 : vector<48x64xf32>
    %c0_12 = arith.constant 0 : index
    %c0_13 = arith.constant 0 : index
    %c0_14 = arith.constant 0 : index
    %11 = vector.load %arg4[%c0_12, %c0_13, %c0_14] : memref<2x48x64xf32, #tpu.memory_space<vmem>>, vector<1x48x64xf32>
    %12 = vector.shape_cast %11 : vector<1x48x64xf32> to vector<48x64xf32>
    %13 = arith.addf %10, %12 : vector<48x64xf32>
    %14 = math.tanh %13 : vector<48x64xf32>
    %c0_15 = arith.constant 0 : index
    %c0_16 = arith.constant 0 : index
    %c0_17 = arith.constant 0 : index
    %15 = vector.load %arg5[%c0_15, %c0_16, %c0_17] : memref<8x64x64xf32, #tpu.memory_space<vmem>>, vector<1x64x64xf32>
    %16 = vector.shape_cast %15 : vector<1x64x64xf32> to vector<64x64xf32>
    %c0_18 = arith.constant 0 : index
    %c0_19 = arith.constant 0 : index
    %c0_20 = arith.constant 0 : index
    %17 = vector.load %arg6[%c0_18, %c0_19, %c0_20] : memref<8x48x48xf32, #tpu.memory_space<vmem>>, vector<1x48x48xf32>
    %18 = vector.shape_cast %17 : vector<1x48x48xf32> to vector<48x48xf32>
    %cst_21 = arith.constant dense<0.000000e+00> : vector<48x64xf32>
    %19 = tpu.matmul %14, %16, %cst_21 {dimension_numbers = #tpu.dot_dimension_numbers<[1], [0], [0], [1], [0, 0, 1, 1], [], []>} : vector<48x64xf32>, vector<64x64xf32>, vector<48x64xf32> -> vector<48x64xf32>
    %cst_22 = arith.constant dense<0.000000e+00> : vector<48x64xf32>
    %20 = tpu.matmul %18, %19, %cst_22 {dimension_numbers = #tpu.dot_dimension_numbers<[1], [0], [0], [1], [0, 0, 1, 1], [], []>} : vector<48x48xf32>, vector<48x64xf32>, vector<48x64xf32> -> vector<48x64xf32>
    %c0_23 = arith.constant 0 : index
    %c0_24 = arith.constant 0 : index
    %c0_25 = arith.constant 0 : index
    %21 = vector.load %arg7[%c0_23, %c0_24, %c0_25] : memref<8x48x64xf32, #tpu.memory_space<vmem>>, vector<1x48x64xf32>
    %22 = vector.shape_cast %21 : vector<1x48x64xf32> to vector<48x64xf32>
    %23 = arith.mulf %20, %22 : vector<48x64xf32>
    %c0_26 = arith.constant 0 : index
    %c0_27 = arith.constant 0 : index
    %c0_28 = arith.constant 0 : index
    %24 = vector.load %arg8[%c0_26, %c0_27, %c0_28] : memref<8x48x64xf32, #tpu.memory_space<vmem>>, vector<1x48x64xf32>
    %25 = vector.shape_cast %24 : vector<1x48x64xf32> to vector<48x64xf32>
    %26 = arith.addf %23, %25 : vector<48x64xf32>
    %27 = math.tanh %26 : vector<48x64xf32>
    %c1 = arith.constant 1 : index
    %c0_29 = arith.constant 0 : index
    %c0_30 = arith.constant 0 : index
    %28 = vector.load %arg5[%c1, %c0_29, %c0_30] : memref<8x64x64xf32, #tpu.memory_space<vmem>>, vector<1x64x64xf32>
    %29 = vector.shape_cast %28 : vector<1x64x64xf32> to vector<64x64xf32>
    %c1_31 = arith.constant 1 : index
    %c0_32 = arith.constant 0 : index
    %c0_33 = arith.constant 0 : index
    %30 = vector.load %arg6[%c1_31, %c0_32, %c0_33] : memref<8x48x48xf32, #tpu.memory_space<vmem>>, vector<1x48x48xf32>
    %31 = vector.shape_cast %30 : vector<1x48x48xf32> to vector<48x48xf32>
    %cst_34 = arith.constant dense<0.000000e+00> : vector<48x64xf32>
    %32 = tpu.matmul %27, %29, %cst_34 {dimension_numbers = #tpu.dot_dimension_numbers<[1], [0], [0], [1], [0, 0, 1, 1], [], []>} : vector<48x64xf32>, vector<64x64xf32>, vector<48x64xf32> -> vector<48x64xf32>
    %cst_35 = arith.constant dense<0.000000e+00> : vector<48x64xf32>
    %33 = tpu.matmul %31, %32, %cst_35 {dimension_numbers = #tpu.dot_dimension_numbers<[1], [0], [0], [1], [0, 0, 1, 1], [], []>} : vector<48x48xf32>, vector<48x64xf32>, vector<48x64xf32> -> vector<48x64xf32>
    %c1_36 = arith.constant 1 : index
    %c0_37 = arith.constant 0 : index
    %c0_38 = arith.constant 0 : index
    %34 = vector.load %arg7[%c1_36, %c0_37, %c0_38] : memref<8x48x64xf32, #tpu.memory_space<vmem>>, vector<1x48x64xf32>
    %35 = vector.shape_cast %34 : vector<1x48x64xf32> to vector<48x64xf32>
    %36 = arith.mulf %33, %35 : vector<48x64xf32>
    %c1_39 = arith.constant 1 : index
    %c0_40 = arith.constant 0 : index
    %c0_41 = arith.constant 0 : index
    %37 = vector.load %arg8[%c1_39, %c0_40, %c0_41] : memref<8x48x64xf32, #tpu.memory_space<vmem>>, vector<1x48x64xf32>
    %38 = vector.shape_cast %37 : vector<1x48x64xf32> to vector<48x64xf32>
    %39 = arith.addf %36, %38 : vector<48x64xf32>
    %40 = math.tanh %39 : vector<48x64xf32>
    %41 = arith.addf %40, %14 : vector<48x64xf32>
    %c2 = arith.constant 2 : index
    %c0_42 = arith.constant 0 : index
    %c0_43 = arith.constant 0 : index
    %42 = vector.load %arg5[%c2, %c0_42, %c0_43] : memref<8x64x64xf32, #tpu.memory_space<vmem>>, vector<1x64x64xf32>
    %43 = vector.shape_cast %42 : vector<1x64x64xf32> to vector<64x64xf32>
    %c2_44 = arith.constant 2 : index
    %c0_45 = arith.constant 0 : index
    %c0_46 = arith.constant 0 : index
    %44 = vector.load %arg6[%c2_44, %c0_45, %c0_46] : memref<8x48x48xf32, #tpu.memory_space<vmem>>, vector<1x48x48xf32>
    %45 = vector.shape_cast %44 : vector<1x48x48xf32> to vector<48x48xf32>
    %cst_47 = arith.constant dense<0.000000e+00> : vector<48x64xf32>
    %46 = tpu.matmul %41, %43, %cst_47 {dimension_numbers = #tpu.dot_dimension_numbers<[1], [0], [0], [1], [0, 0, 1, 1], [], []>} : vector<48x64xf32>, vector<64x64xf32>, vector<48x64xf32> -> vector<48x64xf32>
    %cst_48 = arith.constant dense<0.000000e+00> : vector<48x64xf32>
    %47 = tpu.matmul %45, %46, %cst_48 {dimension_numbers = #tpu.dot_dimension_numbers<[1], [0], [0], [1], [0, 0, 1, 1], [], []>} : vector<48x48xf32>, vector<48x64xf32>, vector<48x64xf32> -> vector<48x64xf32>
    %c2_49 = arith.constant 2 : index
    %c0_50 = arith.constant 0 : index
    %c0_51 = arith.constant 0 : index
    %48 = vector.load %arg7[%c2_49, %c0_50, %c0_51] : memref<8x48x64xf32, #tpu.memory_space<vmem>>, vector<1x48x64xf32>
    %49 = vector.shape_cast %48 : vector<1x48x64xf32> to vector<48x64xf32>
    %50 = arith.mulf %47, %49 : vector<48x64xf32>
    %c2_52 = arith.constant 2 : index
    %c0_53 = arith.constant 0 : index
    %c0_54 = arith.constant 0 : index
    %51 = vector.load %arg8[%c2_52, %c0_53, %c0_54] : memref<8x48x64xf32, #tpu.memory_space<vmem>>, vector<1x48x64xf32>
    %52 = vector.shape_cast %51 : vector<1x48x64xf32> to vector<48x64xf32>
    %53 = arith.addf %50, %52 : vector<48x64xf32>
    %54 = math.tanh %53 : vector<48x64xf32>
    %c3 = arith.constant 3 : index
    %c0_55 = arith.constant 0 : index
    %c0_56 = arith.constant 0 : index
    %55 = vector.load %arg5[%c3, %c0_55, %c0_56] : memref<8x64x64xf32, #tpu.memory_space<vmem>>, vector<1x64x64xf32>
    %56 = vector.shape_cast %55 : vector<1x64x64xf32> to vector<64x64xf32>
    %c3_57 = arith.constant 3 : index
    %c0_58 = arith.constant 0 : index
    %c0_59 = arith.constant 0 : index
    %57 = vector.load %arg6[%c3_57, %c0_58, %c0_59] : memref<8x48x48xf32, #tpu.memory_space<vmem>>, vector<1x48x48xf32>
    %58 = vector.shape_cast %57 : vector<1x48x48xf32> to vector<48x48xf32>
    %cst_60 = arith.constant dense<0.000000e+00> : vector<48x64xf32>
    %59 = tpu.matmul %54, %56, %cst_60 {dimension_numbers = #tpu.dot_dimension_numbers<[1], [0], [0], [1], [0, 0, 1, 1], [], []>} : vector<48x64xf32>, vector<64x64xf32>, vector<48x64xf32> -> vector<48x64xf32>
    %cst_61 = arith.constant dense<0.000000e+00> : vector<48x64xf32>
    %60 = tpu.matmul %58, %59, %cst_61 {dimension_numbers = #tpu.dot_dimension_numbers<[1], [0], [0], [1], [0, 0, 1, 1], [], []>} : vector<48x48xf32>, vector<48x64xf32>, vector<48x64xf32> -> vector<48x64xf32>
    %c3_62 = arith.constant 3 : index
    %c0_63 = arith.constant 0 : index
    %c0_64 = arith.constant 0 : index
    %61 = vector.load %arg7[%c3_62, %c0_63, %c0_64] : memref<8x48x64xf32, #tpu.memory_space<vmem>>, vector<1x48x64xf32>
    %62 = vector.shape_cast %61 : vector<1x48x64xf32> to vector<48x64xf32>
    %63 = arith.mulf %60, %62 : vector<48x64xf32>
    %c3_65 = arith.constant 3 : index
    %c0_66 = arith.constant 0 : index
    %c0_67 = arith.constant 0 : index
    %64 = vector.load %arg8[%c3_65, %c0_66, %c0_67] : memref<8x48x64xf32, #tpu.memory_space<vmem>>, vector<1x48x64xf32>
    %65 = vector.shape_cast %64 : vector<1x48x64xf32> to vector<48x64xf32>
    %66 = arith.addf %63, %65 : vector<48x64xf32>
    %67 = math.tanh %66 : vector<48x64xf32>
    %68 = arith.addf %67, %41 : vector<48x64xf32>
    %c0_68 = arith.constant 0 : index
    %c0_69 = arith.constant 0 : index
    %c0_70 = arith.constant 0 : index
    %69 = vector.load %arg9[%c0_68, %c0_69, %c0_70] : memref<2x64x32xf32, #tpu.memory_space<vmem>>, vector<1x64x32xf32>
    %70 = vector.shape_cast %69 : vector<1x64x32xf32> to vector<64x32xf32>
    %c0_71 = arith.constant 0 : index
    %c0_72 = arith.constant 0 : index
    %c0_73 = arith.constant 0 : index
    %71 = vector.load %arg10[%c0_71, %c0_72, %c0_73] : memref<2x48x48xf32, #tpu.memory_space<vmem>>, vector<1x48x48xf32>
    %72 = vector.shape_cast %71 : vector<1x48x48xf32> to vector<48x48xf32>
    %cst_74 = arith.constant dense<0.000000e+00> : vector<48x32xf32>
    %73 = tpu.matmul %68, %70, %cst_74 {dimension_numbers = #tpu.dot_dimension_numbers<[1], [0], [0], [1], [0, 0, 1, 1], [], []>} : vector<48x64xf32>, vector<64x32xf32>, vector<48x32xf32> -> vector<48x32xf32>
    %cst_75 = arith.constant dense<0.000000e+00> : vector<48x32xf32>
    %74 = tpu.matmul %72, %73, %cst_75 {dimension_numbers = #tpu.dot_dimension_numbers<[1], [0], [0], [1], [0, 0, 1, 1], [], []>} : vector<48x48xf32>, vector<48x32xf32>, vector<48x32xf32> -> vector<48x32xf32>
    %c0_76 = arith.constant 0 : index
    %c0_77 = arith.constant 0 : index
    %c0_78 = arith.constant 0 : index
    %75 = vector.load %arg11[%c0_76, %c0_77, %c0_78] : memref<2x1x32xf32, #tpu.memory_space<vmem>>, vector<1x1x32xf32>
    %76 = vector.shape_cast %75 : vector<1x1x32xf32> to vector<1x32xf32>
    %77 = vector.broadcast %76 : vector<1x32xf32> to vector<48x32xf32>
    %78 = arith.addf %74, %77 : vector<48x32xf32>
    %cst_79 = arith.constant 2.000000e+00 : f32
    %79 = vector.broadcast %cst_79 : f32 to vector<48x32xf32>
    %80 = arith.mulf %79, %1 : vector<48x32xf32>
    %81 = arith.addf %78, %80 : vector<48x32xf32>
    %c0_80 = arith.constant 0 : index
    %c0_81 = arith.constant 0 : index
    %c0_82 = arith.constant 0 : index
    %82 = vector.load %arg12[%c0_80, %c0_81, %c0_82] : memref<2x48x32xf32, #tpu.memory_space<vmem>>, vector<1x48x32xf32>
    %83 = vector.shape_cast %82 : vector<1x48x32xf32> to vector<48x32xf32>
    %84 = vector.shape_cast %81 : vector<48x32xf32> to vector<1x48x32xf32>
    tpu.vector_store %arg12[%c0_80, %c0_81, %c0_82], %84 {strides = array<i32>} : memref<2x48x32xf32, #tpu.memory_space<vmem>>, vector<1x48x32xf32>,
    %c1_83 = arith.constant 1 : index
    %c0_84 = arith.constant 0 : index
    %c0_85 = arith.constant 0 : index
    %85 = vector.load %arg0[%c1_83, %c0_84, %c0_85] : memref<2x48x32xf32, #tpu.memory_space<vmem>>, vector<1x48x32xf32>
    %86 = vector.shape_cast %85 : vector<1x48x32xf32> to vector<48x32xf32>
    %c1_86 = arith.constant 1 : index
    %c0_87 = arith.constant 0 : index
    %c0_88 = arith.constant 0 : index
    %87 = vector.load %arg1[%c1_86, %c0_87, %c0_88] : memref<2x32x64xf32, #tpu.memory_space<vmem>>, vector<1x32x64xf32>
    %88 = vector.shape_cast %87 : vector<1x32x64xf32> to vector<32x64xf32>
    %c1_89 = arith.constant 1 : index
    %c0_90 = arith.constant 0 : index
    %c0_91 = arith.constant 0 : index
    %89 = vector.load %arg2[%c1_89, %c0_90, %c0_91] : memref<2x48x48xf32, #tpu.memory_space<vmem>>, vector<1x48x48xf32>
    %90 = vector.shape_cast %89 : vector<1x48x48xf32> to vector<48x48xf32>
    %cst_92 = arith.constant dense<0.000000e+00> : vector<48x64xf32>
    %91 = tpu.matmul %86, %88, %cst_92 {dimension_numbers = #tpu.dot_dimension_numbers<[1], [0], [0], [1], [0, 0, 1, 1], [], []>} : vector<48x32xf32>, vector<32x64xf32>, vector<48x64xf32> -> vector<48x64xf32>
    %cst_93 = arith.constant dense<0.000000e+00> : vector<48x64xf32>
    %92 = tpu.matmul %90, %91, %cst_93 {dimension_numbers = #tpu.dot_dimension_numbers<[1], [0], [0], [1], [0, 0, 1, 1], [], []>} : vector<48x48xf32>, vector<48x64xf32>, vector<48x64xf32> -> vector<48x64xf32>
    %c1_94 = arith.constant 1 : index
    %c0_95 = arith.constant 0 : index
    %c0_96 = arith.constant 0 : index
    %93 = vector.load %arg3[%c1_94, %c0_95, %c0_96] : memref<2x48x64xf32, #tpu.memory_space<vmem>>, vector<1x48x64xf32>
    %94 = vector.shape_cast %93 : vector<1x48x64xf32> to vector<48x64xf32>
    %95 = arith.mulf %92, %94 : vector<48x64xf32>
    %c1_97 = arith.constant 1 : index
    %c0_98 = arith.constant 0 : index
    %c0_99 = arith.constant 0 : index
    %96 = vector.load %arg4[%c1_97, %c0_98, %c0_99] : memref<2x48x64xf32, #tpu.memory_space<vmem>>, vector<1x48x64xf32>
    %97 = vector.shape_cast %96 : vector<1x48x64xf32> to vector<48x64xf32>
    %98 = arith.addf %95, %97 : vector<48x64xf32>
    %99 = math.tanh %98 : vector<48x64xf32>
    %c4 = arith.constant 4 : index
    %c0_100 = arith.constant 0 : index
    %c0_101 = arith.constant 0 : index
    %100 = vector.load %arg5[%c4, %c0_100, %c0_101] : memref<8x64x64xf32, #tpu.memory_space<vmem>>, vector<1x64x64xf32>
    %101 = vector.shape_cast %100 : vector<1x64x64xf32> to vector<64x64xf32>
    %c4_102 = arith.constant 4 : index
    %c0_103 = arith.constant 0 : index
    %c0_104 = arith.constant 0 : index
    %102 = vector.load %arg6[%c4_102, %c0_103, %c0_104] : memref<8x48x48xf32, #tpu.memory_space<vmem>>, vector<1x48x48xf32>
    %103 = vector.shape_cast %102 : vector<1x48x48xf32> to vector<48x48xf32>
    %cst_105 = arith.constant dense<0.000000e+00> : vector<48x64xf32>
    %104 = tpu.matmul %99, %101, %cst_105 {dimension_numbers = #tpu.dot_dimension_numbers<[1], [0], [0], [1], [0, 0, 1, 1], [], []>} : vector<48x64xf32>, vector<64x64xf32>, vector<48x64xf32> -> vector<48x64xf32>
    %cst_106 = arith.constant dense<0.000000e+00> : vector<48x64xf32>
    %105 = tpu.matmul %103, %104, %cst_106 {dimension_numbers = #tpu.dot_dimension_numbers<[1], [0], [0], [1], [0, 0, 1, 1], [], []>} : vector<48x48xf32>, vector<48x64xf32>, vector<48x64xf32> -> vector<48x64xf32>
    %c4_107 = arith.constant 4 : index
    %c0_108 = arith.constant 0 : index
    %c0_109 = arith.constant 0 : index
    %106 = vector.load %arg7[%c4_107, %c0_108, %c0_109] : memref<8x48x64xf32, #tpu.memory_space<vmem>>, vector<1x48x64xf32>
    %107 = vector.shape_cast %106 : vector<1x48x64xf32> to vector<48x64xf32>
    %108 = arith.mulf %105, %107 : vector<48x64xf32>
    %c4_110 = arith.constant 4 : index
    %c0_111 = arith.constant 0 : index
    %c0_112 = arith.constant 0 : index
    %109 = vector.load %arg8[%c4_110, %c0_111, %c0_112] : memref<8x48x64xf32, #tpu.memory_space<vmem>>, vector<1x48x64xf32>
    %110 = vector.shape_cast %109 : vector<1x48x64xf32> to vector<48x64xf32>
    %111 = arith.addf %108, %110 : vector<48x64xf32>
    %112 = math.tanh %111 : vector<48x64xf32>
    %c5 = arith.constant 5 : index
    %c0_113 = arith.constant 0 : index
    %c0_114 = arith.constant 0 : index
    %113 = vector.load %arg5[%c5, %c0_113, %c0_114] : memref<8x64x64xf32, #tpu.memory_space<vmem>>, vector<1x64x64xf32>
    %114 = vector.shape_cast %113 : vector<1x64x64xf32> to vector<64x64xf32>
    %c5_115 = arith.constant 5 : index
    %c0_116 = arith.constant 0 : index
    %c0_117 = arith.constant 0 : index
    %115 = vector.load %arg6[%c5_115, %c0_116, %c0_117] : memref<8x48x48xf32, #tpu.memory_space<vmem>>, vector<1x48x48xf32>
    %116 = vector.shape_cast %115 : vector<1x48x48xf32> to vector<48x48xf32>
    %cst_118 = arith.constant dense<0.000000e+00> : vector<48x64xf32>
    %117 = tpu.matmul %112, %114, %cst_118 {dimension_numbers = #tpu.dot_dimension_numbers<[1], [0], [0], [1], [0, 0, 1, 1], [], []>} : vector<48x64xf32>, vector<64x64xf32>, vector<48x64xf32> -> vector<48x64xf32>
    %cst_119 = arith.constant dense<0.000000e+00> : vector<48x64xf32>
    %118 = tpu.matmul %116, %117, %cst_119 {dimension_numbers = #tpu.dot_dimension_numbers<[1], [0], [0], [1], [0, 0, 1, 1], [], []>} : vector<48x48xf32>, vector<48x64xf32>, vector<48x64xf32> -> vector<48x64xf32>
    %c5_120 = arith.constant 5 : index
    %c0_121 = arith.constant 0 : index
    %c0_122 = arith.constant 0 : index
    %119 = vector.load %arg7[%c5_120, %c0_121, %c0_122] : memref<8x48x64xf32, #tpu.memory_space<vmem>>, vector<1x48x64xf32>
    %120 = vector.shape_cast %119 : vector<1x48x64xf32> to vector<48x64xf32>
    %121 = arith.mulf %118, %120 : vector<48x64xf32>
    %c5_123 = arith.constant 5 : index
    %c0_124 = arith.constant 0 : index
    %c0_125 = arith.constant 0 : index
    %122 = vector.load %arg8[%c5_123, %c0_124, %c0_125] : memref<8x48x64xf32, #tpu.memory_space<vmem>>, vector<1x48x64xf32>
    %123 = vector.shape_cast %122 : vector<1x48x64xf32> to vector<48x64xf32>
    %124 = arith.addf %121, %123 : vector<48x64xf32>
    %125 = math.tanh %124 : vector<48x64xf32>
    %126 = arith.addf %125, %99 : vector<48x64xf32>
    %c6 = arith.constant 6 : index
    %c0_126 = arith.constant 0 : index
    %c0_127 = arith.constant 0 : index
    %127 = vector.load %arg5[%c6, %c0_126, %c0_127] : memref<8x64x64xf32, #tpu.memory_space<vmem>>, vector<1x64x64xf32>
    %128 = vector.shape_cast %127 : vector<1x64x64xf32> to vector<64x64xf32>
    %c6_128 = arith.constant 6 : index
    %c0_129 = arith.constant 0 : index
    %c0_130 = arith.constant 0 : index
    %129 = vector.load %arg6[%c6_128, %c0_129, %c0_130] : memref<8x48x48xf32, #tpu.memory_space<vmem>>, vector<1x48x48xf32>
    %130 = vector.shape_cast %129 : vector<1x48x48xf32> to vector<48x48xf32>
    %cst_131 = arith.constant dense<0.000000e+00> : vector<48x64xf32>
    %131 = tpu.matmul %126, %128, %cst_131 {dimension_numbers = #tpu.dot_dimension_numbers<[1], [0], [0], [1], [0, 0, 1, 1], [], []>} : vector<48x64xf32>, vector<64x64xf32>, vector<48x64xf32> -> vector<48x64xf32>
    %cst_132 = arith.constant dense<0.000000e+00> : vector<48x64xf32>
    %132 = tpu.matmul %130, %131, %cst_132 {dimension_numbers = #tpu.dot_dimension_numbers<[1], [0], [0], [1], [0, 0, 1, 1], [], []>} : vector<48x48xf32>, vector<48x64xf32>, vector<48x64xf32> -> vector<48x64xf32>
    %c6_133 = arith.constant 6 : index
    %c0_134 = arith.constant 0 : index
    %c0_135 = arith.constant 0 : index
    %133 = vector.load %arg7[%c6_133, %c0_134, %c0_135] : memref<8x48x64xf32, #tpu.memory_space<vmem>>, vector<1x48x64xf32>
    %134 = vector.shape_cast %133 : vector<1x48x64xf32> to vector<48x64xf32>
    %135 = arith.mulf %132, %134 : vector<48x64xf32>
    %c6_136 = arith.constant 6 : index
    %c0_137 = arith.constant 0 : index
    %c0_138 = arith.constant 0 : index
    %136 = vector.load %arg8[%c6_136, %c0_137, %c0_138] : memref<8x48x64xf32, #tpu.memory_space<vmem>>, vector<1x48x64xf32>
    %137 = vector.shape_cast %136 : vector<1x48x64xf32> to vector<48x64xf32>
    %138 = arith.addf %135, %137 : vector<48x64xf32>
    %139 = math.tanh %138 : vector<48x64xf32>
    %c7 = arith.constant 7 : index
    %c0_139 = arith.constant 0 : index
    %c0_140 = arith.constant 0 : index
    %140 = vector.load %arg5[%c7, %c0_139, %c0_140] : memref<8x64x64xf32, #tpu.memory_space<vmem>>, vector<1x64x64xf32>
    %141 = vector.shape_cast %140 : vector<1x64x64xf32> to vector<64x64xf32>
    %c7_141 = arith.constant 7 : index
    %c0_142 = arith.constant 0 : index
    %c0_143 = arith.constant 0 : index
    %142 = vector.load %arg6[%c7_141, %c0_142, %c0_143] : memref<8x48x48xf32, #tpu.memory_space<vmem>>, vector<1x48x48xf32>
    %143 = vector.shape_cast %142 : vector<1x48x48xf32> to vector<48x48xf32>
    %cst_144 = arith.constant dense<0.000000e+00> : vector<48x64xf32>
    %144 = tpu.matmul %139, %141, %cst_144 {dimension_numbers = #tpu.dot_dimension_numbers<[1], [0], [0], [1], [0, 0, 1, 1], [], []>} : vector<48x64xf32>, vector<64x64xf32>, vector<48x64xf32> -> vector<48x64xf32>
    %cst_145 = arith.constant dense<0.000000e+00> : vector<48x64xf32>
    %145 = tpu.matmul %143, %144, %cst_145 {dimension_numbers = #tpu.dot_dimension_numbers<[1], [0], [0], [1], [0, 0, 1, 1], [], []>} : vector<48x48xf32>, vector<48x64xf32>, vector<48x64xf32> -> vector<48x64xf32>
    %c7_146 = arith.constant 7 : index
    %c0_147 = arith.constant 0 : index
    %c0_148 = arith.constant 0 : index
    %146 = vector.load %arg7[%c7_146, %c0_147, %c0_148] : memref<8x48x64xf32, #tpu.memory_space<vmem>>, vector<1x48x64xf32>
    %147 = vector.shape_cast %146 : vector<1x48x64xf32> to vector<48x64xf32>
    %148 = arith.mulf %145, %147 : vector<48x64xf32>
    %c7_149 = arith.constant 7 : index
    %c0_150 = arith.constant 0 : index
    %c0_151 = arith.constant 0 : index
    %149 = vector.load %arg8[%c7_149, %c0_150, %c0_151] : memref<8x48x64xf32, #tpu.memory_space<vmem>>, vector<1x48x64xf32>
    %150 = vector.shape_cast %149 : vector<1x48x64xf32> to vector<48x64xf32>
    %151 = arith.addf %148, %150 : vector<48x64xf32>
    %152 = math.tanh %151 : vector<48x64xf32>
    %153 = arith.addf %152, %126 : vector<48x64xf32>
    %c1_152 = arith.constant 1 : index
    %c0_153 = arith.constant 0 : index
    %c0_154 = arith.constant 0 : index
    %154 = vector.load %arg9[%c1_152, %c0_153, %c0_154] : memref<2x64x32xf32, #tpu.memory_space<vmem>>, vector<1x64x32xf32>
    %155 = vector.shape_cast %154 : vector<1x64x32xf32> to vector<64x32xf32>
    %c1_155 = arith.constant 1 : index
    %c0_156 = arith.constant 0 : index
    %c0_157 = arith.constant 0 : index
    %156 = vector.load %arg10[%c1_155, %c0_156, %c0_157] : memref<2x48x48xf32, #tpu.memory_space<vmem>>, vector<1x48x48xf32>
    %157 = vector.shape_cast %156 : vector<1x48x48xf32> to vector<48x48xf32>
    %cst_158 = arith.constant dense<0.000000e+00> : vector<48x32xf32>
    %158 = tpu.matmul %153, %155, %cst_158 {dimension_numbers = #tpu.dot_dimension_numbers<[1], [0], [0], [1], [0, 0, 1, 1], [], []>} : vector<48x64xf32>, vector<64x32xf32>, vector<48x32xf32> -> vector<48x32xf32>
    %cst_159 = arith.constant dense<0.000000e+00> : vector<48x32xf32>
    %159 = tpu.matmul %157, %158, %cst_159 {dimension_numbers = #tpu.dot_dimension_numbers<[1], [0], [0], [1], [0, 0, 1, 1], [], []>} : vector<48x48xf32>, vector<48x32xf32>, vector<48x32xf32> -> vector<48x32xf32>
    %c1_160 = arith.constant 1 : index
    %c0_161 = arith.constant 0 : index
    %c0_162 = arith.constant 0 : index
    %160 = vector.load %arg11[%c1_160, %c0_161, %c0_162] : memref<2x1x32xf32, #tpu.memory_space<vmem>>, vector<1x1x32xf32>
    %161 = vector.shape_cast %160 : vector<1x1x32xf32> to vector<1x32xf32>
    %162 = vector.broadcast %161 : vector<1x32xf32> to vector<48x32xf32>
    %163 = arith.addf %159, %162 : vector<48x32xf32>
    %cst_163 = arith.constant 2.000000e+00 : f32
    %164 = vector.broadcast %cst_163 : f32 to vector<48x32xf32>
    %165 = arith.mulf %164, %86 : vector<48x32xf32>
    %166 = arith.addf %163, %165 : vector<48x32xf32>
    %c1_164 = arith.constant 1 : index
    %c0_165 = arith.constant 0 : index
    %c0_166 = arith.constant 0 : index
    %167 = vector.load %arg12[%c1_164, %c0_165, %c0_166] : memref<2x48x32xf32, #tpu.memory_space<vmem>>, vector<1x48x32xf32>
    %168 = vector.shape_cast %167 : vector<1x48x32xf32> to vector<48x32xf32>
    %169 = vector.shape_cast %166 : vector<48x32xf32> to vector<1x48x32xf32>
    tpu.vector_store %arg12[%c1_164, %c0_165, %c0_166], %169 {strides = array<i32>} : memref<2x48x32xf32, #tpu.memory_space<vmem>>, vector<1x48x32xf32>,
    return
  }
}

</mosaic_0001>

<bundles_post_ra>
// kernel: tile.193
= control target key start
LH: loop header
LB: loop body
LE: loop exit
PB: predicated region body
PF: predicated region fallthrough
CT: control target
= control target key end

     0   :  { %s22_s0 = inlined_call_operand.vmem [shape: f32[16], index: 0, kind: input, shape index: {}]   ;;  %s23_s1 = inlined_call_operand.vmem [shape: f32[2,16], index: 1, kind: output, shape index: {}]  }
   0x1   :  { %v4_v0 = vld [vmem:[%s22_s0] ss:$0 sm:$0xff] }
   0x2   :  { %5 = vst [vmem:[%s23_s1] sm:$0x3] %v4_v0 }

// kernel: tile.198
= control target key start
LH: loop header
LB: loop body
LE: loop exit
PB: predicated region body
PF: predicated region fallthrough
CT: control target
= control target key end

     0   :  { %vm8_vm0 = vcmask 130048   ;;  %vm14_vm1 = vcmask 261248   ;;  %s42_s0 = inlined_call_operand.vmem [shape: f32[2,16], index: 0, kind: input, shape index: {}]   ;;  %s43_s1 = inlined_call_operand.vmem [shape: f32[1,1,32], index: 1, kind: output, shape index: {}]  }
   0x1   :  { %v5_v0 = vld [vmem:[%s42_s0] sm:$0x3]  ;;  %s25_s0 = smov 16  }
   0x2   :  { %6 = vst [vmem:[#allocation1] sm:$0x3] %v5_v0 }
   0x9   :  { %v11_v1 = vld [vmem:[#allocation1 + $0x1] sm:$0x1]   ;;  %v7_v2 = vld [vmem:[#allocation1] sm:$0x1]  }
   0xa   :  { %12 = vrot.lane.b32.xlu0 %v11_v1, %s25_s0  ;;  %9 = vst.msk [vmem:[#allocation0] sm:$0x1] %vm8_vm0, %v7_v2  }
  0x7c   :  { %v13_v3 = vpop.permute.xlu0 %12  }
  0x7d   :  { %15 = vst.msk [vmem:[#allocation0] sm:$0x1] %vm14_vm1, %v13_v3  }
  0x84   :  { %v20_v4 = vld [vmem:[#allocation0] sm:$0x1] }
  0x85   :  { %23 = vst [vmem:[%s43_s1] sm:$0x1] %v20_v4 }

// kernel: _lambda_.1
= control target key start
LH: loop header
LB: loop body
LE: loop exit
PB: predicated region body
PF: predicated region fallthrough
CT: control target
= control target key end

     0   :  { %vm57_vm0 = vcmask 261120   ;;  %vm171_vm1 = vcmask 392192   ;;  %vm329_vm2 = vcmask 523264   ;;  %s5963_s1 = inlined_call_operand.vmem [shape: f32[2,32,64], index: 1, kind: input, shape index: {}]   ;;  %s5964_s0 = inlined_call_operand.vmem [shape: f32[2,48,32], index: 0, kind: input, shape index: {}]   ;;  %s5965_s2 = inlined_call_operand.vmem [shape: f32[2,48,48], index: 2, kind: input, shape index: {}]   ;;  %s5966_s5 = inlined_call_operand.vmem [shape: f32[8,64,64], index: 5, kind: input, shape index: {}]   ;;  %s5967_s3 = inlined_call_operand.vmem [shape: f32[2,48,64], index: 3, kind: input, shape index: {}]   ;;  %s5968_s4 = inlined_call_operand.vmem [shape: f32[2,48,64], index: 4, kind: input, shape index: {}]   ;;  %s5969_s6 = inlined_call_operand.vmem [shape: f32[8,48,48], index: 6, kind: input, shape index: {}]   ;;  %s5970_s7 = inlined_call_operand.vmem [shape: f32[8,48,64], index: 7, kind: input, shape index: {}]   ;;  %s5971_s8 = inlined_call_operand.vmem [shape: f32[8,48,64], index: 8, kind: input, shape index: {}]   ;;  %s5972_s9 = inlined_call_operand.vmem [shape: f32[2,64,32], index: 9, kind: input, shape index: {}]   ;;  %s5973_s10 = inlined_call_operand.vmem [shape: f32[2,48,48], index: 10, kind: input, shape index: {}]   ;;  %s5974_s11 = inlined_call_operand.vmem [shape: f32[2,1,32], index: 11, kind: input, shape index: {}]   ;;  %s5975_s12 = inlined_call_operand.vmem [shape: f32[2,48,32], index: 12, kind: output, shape index: {}]  }
   0x1   :  { %v50_v0 = vld [vmem:[%s5963_s1 + $0x18] sm:$0xff]  ;;  %v49_v1 = vld [vmem:[%s5963_s1 + $0x10] sm:$0xff]  ;;  %v41_v2 = vld [vmem:[%s5964_s0] sm:$0xff] }
   0x2   :  { %4024 = vmatprep.subr.mxu0 %v50_v0  ;;  %v48_v3 = vld [vmem:[%s5963_s1 + $0x8] sm:$0xff]  ;;  %4032 = vmatprep.mubr.msk.f32.mxu0 %vm57_vm0, %v41_v2  ;;  %v47_v4 = vld [vmem:[%s5963_s1] sm:$0xff]  ;;  %v43_v6 = vld [vmem:[%s5964_s0 + $0x10] sm:$0xff] }
   0x3   :  { %4025 = vmatpush3.msra.mxu0 %v50_v0  ;;  %v42_v5 = vld [vmem:[%s5964_s0 + $0x8] sm:$0xff]  ;;  %v44_v7 = vld [vmem:[%s5964_s0 + $0x18] sm:$0xff]  ;;  %v45_v8 = vld [vmem:[%s5964_s0 + $0x20] sm:$0xff] }
   0x4   :  { %4026 = vmatprep.subr.mxu0 %v49_v1  ;;  %v46_v9 = vld [vmem:[%s5964_s0 + $0x28] sm:$0xff]  ;;  %v51_v10 = vld [vmem:[%s5965_s2] sm:$0xff]  ;;  %v53_v18 = vld [vmem:[%s5965_s2 + $0x10] sm:$0xff] }
   0x5   :  { %4027 = vmatpush3.msra.mxu0 %v49_v1  ;;  %4053 = vmatprep.mubr.msk.f32.mxu1 %vm171_vm1, %v51_v10  ;;  %v52_v17 = vld [vmem:[%s5965_s2 + $0x8] sm:$0xff]  ;;  %v54_v19 = vld [vmem:[%s5965_s2 + $0x18] sm:$0xff]  ;;  %v55_v20 = vld [vmem:[%s5965_s2 + $0x20] sm:$0xff] }
   0x6   :  { %4028 = vmatprep.subr.mxu0 %v48_v3  ;;  %v56_v21 = vld [vmem:[%s5965_s2 + $0x28] sm:$0xff]  ;;  %v322_v22 = vld [vmem:[%s5966_s5 + $0x38] sm:$0xff]  ;;  %v321_v23 = vld [vmem:[%s5966_s5 + $0x30] sm:$0xff] }
   0x7   :  { %4029 = vmatpush3.msra.mxu0 %v48_v3  ;;  %v320_v24 = vld [vmem:[%s5966_s5 + $0x28] sm:$0xff]  ;;  %v319_v25 = vld [vmem:[%s5966_s5 + $0x20] sm:$0xff]  ;;  %v318_v26 = vld [vmem:[%s5966_s5 + $0x18] sm:$0xff] }
   0x8   :  { %4030 = vmatprep.subr.mxu0 %v47_v4  ;;  %v317_v27 = vld [vmem:[%s5966_s5 + $0x10] sm:$0xff]  ;;  %v316_v28 = vld [vmem:[%s5966_s5 + $0x8] sm:$0xff]  ;;  %v315_v29 = vld [vmem:[%s5966_s5] sm:$0xff] }
   0x9   :  { %4031 = vmatpush3.msra.mxu0 %v47_v4  ;;  %v286_v30 = vld [vmem:[%s5967_s3 + $0x8] sm:$0xff]  ;;  %v285_v32 = vld [vmem:[%s5967_s3] sm:$0xff]  ;;  %v288_v37 = vld [vmem:[%s5967_s3 + $0x18] sm:$0xff] }
   0xa   :  { %4033 = vmatmul.mubr.msk.f32.vlgmr.msra.gmra.mxu0 %vm57_vm0, %v42_v5  ;;  %4062 = vmatprep.subr.mxu0 %v322_v22  ;;  %v298_v34 = vld [vmem:[%s5968_s4 + $0x8] sm:$0xff]  ;;  %v297_v36 = vld [vmem:[%s5968_s4] sm:$0xff]  ;;  %v287_v41 = vld [vmem:[%s5967_s3 + $0x10] sm:$0xff] }
   0xb   :  { %4035 = vmatprep.mubr.msk.f32.mxu0 %vm57_vm0, %v43_v6  ;;  %4063 = vmatpush3.msra.mxu0 %v322_v22  ;;  %v300_v44 = vld [vmem:[%s5968_s4 + $0x18] sm:$0xff]  ;;  %v299_v46 = vld [vmem:[%s5968_s4 + $0x10] sm:$0xff]  ;;  %v290_v47 = vld [vmem:[%s5967_s3 + $0x28] sm:$0xff] }
   0xc   :  { %4064 = vmatprep.subr.mxu0 %v321_v23  ;;  %v289_v51 = vld [vmem:[%s5967_s3 + $0x20] sm:$0xff]  ;;  %v302_v54 = vld [vmem:[%s5968_s4 + $0x28] sm:$0xff]  ;;  %v325_v10 = vld [vmem:[%s5969_s6 + $0x10] sm:$0xff] }
   0xd   :  { %4065 = vmatpush3.msra.mxu0 %v321_v23  ;;  %v301_v56 = vld [vmem:[%s5968_s4 + $0x20] sm:$0xff]  ;;  %v557_v22 = vld [vmem:[%s5970_s7 + $0x8] sm:$0xff] }
   0xe   :  { %4036 = vmatmul.mubr.msk.f32.gmra.mxu0 %vm57_vm0, %v44_v7  ;;  %4066 = vmatprep.subr.mxu0 %v320_v24  ;;  %v323_v2 = vld [vmem:[%s5969_s6] sm:$0xff] }
   0xf   :  { %4038 = vmatprep.mubr.msk.f32.mxu0 %vm57_vm0, %v45_v8  ;;  %4067 = vmatpush3.msra.mxu0 %v320_v24  ;;  %v556_v24 = vld [vmem:[%s5970_s7] sm:$0xff] }
  0x10   :  { %4068 = vmatprep.subr.mxu0 %v319_v25 }
  0x11   :  { %4069 = vmatpush3.msra.mxu0 %v319_v25 }
  0x12   :  { %4039 = vmatmul.mubr.msk.f32.gmra.mxu0 %vm57_vm0, %v46_v9  ;;  %4070 = vmatprep.subr.mxu0 %v318_v26  ;;  %v324_v9 = vld [vmem:[%s5969_s6 + $0x8] sm:$0xff] }
  0x13   :  { %4071 = vmatpush3.msra.mxu0 %v318_v26  ;;  %v569_v26 = vld [vmem:[%s5971_s8 + $0x8] sm:$0xff] }
  0x14   :  { %4072 = vmatprep.subr.mxu0 %v317_v27 }
  0x15   :  { %4073 = vmatpush3.msra.mxu0 %v317_v27 }
  0x16   :  { %4074 = vmatprep.subr.mxu0 %v316_v28 }
  0x17   :  { %4075 = vmatpush3.msra.mxu0 %v316_v28  ;;  %v568_v28 = vld [vmem:[%s5971_s8] sm:$0xff] }
  0x18   :  { %4076 = vmatprep.subr.mxu0 %v315_v29 }
  0x19   :  { %4077 = vmatpush3.msra.mxu0 %v315_v29  ;;  %v559_v29 = vld [vmem:[%s5970_s7 + $0x18] sm:$0xff] }
  0xca   :  { %v4034_v11 = vpop.f32.mrf.mxu0 }
  0xcc   :  { %v142_v12 = vpop.f32.mrf.mxu0 }
  0xce   :  { %v4037_v13 = vpop.f32.mrf.mxu0 }
  0xd0   :  { %v152_v14 = vpop.f32.mrf.mxu0 }
  0xd2   :  { %v4040_v15 = vpop.f32.mrf.mxu0 }
  0xd3   :  { %4041 = vmatprep.subr.mxu1 %v4040_v15 }
  0xd4   :  { %v162_v16 = vpop.f32.mrf.mxu0  ;;  %4042 = vmatpush3.msra.mxu1 %v4040_v15  ;;  %v3373_v15 = vld [vmem:[%s5966_s5 + $0x70] sm:$0xff] }
  0xd5   :  { %4043 = vmatprep.subr.mxu1 %v162_v16 }
  0xd6   :  { %4044 = vmatpush3.msra.mxu1 %v162_v16  ;;  %v3372_v16 = vld [vmem:[%s5966_s5 + $0x68] sm:$0xff] }
  0xd7   :  { %4045 = vmatprep.subr.mxu1 %v4037_v13 }
  0xd8   :  { %4046 = vmatpush3.msra.mxu1 %v4037_v13  ;;  %v328_v13 = vld [vmem:[%s5969_s6 + $0x28] sm:$0xff] }
  0xd9   :  { %4047 = vmatprep.subr.mxu1 %v152_v14 }
  0xda   :  { %4048 = vmatpush3.msra.mxu1 %v152_v14  ;;  %v3374_v14 = vld [vmem:[%s5966_s5 + $0x78] sm:$0xff] }
  0xdb   :  { %4049 = vmatprep.subr.mxu1 %v4034_v11  ;;  %4108 = vmatprep.subr.mxu0 %v3374_v14 }
  0xdc   :  { %4050 = vmatpush3.msra.mxu1 %v4034_v11  ;;  %v326_v11 = vld [vmem:[%s5969_s6 + $0x18] sm:$0xff] }
  0xdd   :  { %4051 = vmatprep.subr.mxu1 %v142_v12 }
  0xde   :  { %4052 = vmatpush3.msra.mxu1 %v142_v12  ;;  %v327_v12 = vld [vmem:[%s5969_s6 + $0x20] sm:$0xff] }
  0xdf   :  { %4054 = vmatmul.mubr.msk.f32.vlgmr.msra.gmra.mxu1 %vm171_vm1, %v52_v17  ;;  %v3371_v17 = vld [vmem:[%s5966_s5 + $0x60] sm:$0xff] }
  0xe0   :  { %4056 = vmatprep.mubr.msk.f32.mxu1 %vm171_vm1, %v53_v18  ;;  %v3370_v18 = vld [vmem:[%s5966_s5 + $0x58] sm:$0xff] }
  0xe3   :  { %4057 = vmatmul.mubr.msk.f32.gmra.mxu1 %vm171_vm1, %v54_v19  ;;  %v3369_v19 = vld [vmem:[%s5966_s5 + $0x50] sm:$0xff] }
  0xe4   :  { %4059 = vmatprep.mubr.msk.f32.mxu1 %vm171_vm1, %v55_v20  ;;  %v3368_v20 = vld [vmem:[%s5966_s5 + $0x48] sm:$0xff] }
  0xe7   :  { %4060 = vmatmul.mubr.msk.f32.gmra.mxu1 %vm171_vm1, %v56_v21  ;;  %v3367_v21 = vld [vmem:[%s5966_s5 + $0x40] sm:$0xff] }
  0xe8   :  { %4099 = vmatprep.mubr.msk.f32.mxu1 %vm171_vm1, %v323_v2 }
 0x19f   :  { %v4055_v31 = vpop.f32.mrf.mxu1 }
 0x1a0   :  { %v292_v33 = vmul.f32 %v4055_v31, %v286_v30 }
 0x1a1   :  { %v256_v35 = vpop.f32.mrf.mxu1 }
 0x1a2   :  { %v291_v38 = vmul.f32 %v285_v32, %v256_v35  ;;  %v304_v39 = vadd.f32 %v298_v34, %v292_v33  ;;  %v558_v33 = vld [vmem:[%s5970_s7 + $0x10] sm:$0xff] }
 0x1a3   :  { %v4058_v40 = vpop.f32.mrf.mxu1 }
 0x1a4   :  { %v303_v42 = vadd.f32 %v297_v36, %v291_v38  ;;  %v294_v43 = vmul.f32 %v4058_v40, %v288_v37  ;;  %v571_v36 = vld [vmem:[%s5971_s8 + $0x18] sm:$0xff]  ;;  %v570_v38 = vld [vmem:[%s5971_s8 + $0x10] sm:$0xff] }
 0x1a5   :  { %v266_v45 = vpop.f32.mrf.mxu1 }
 0x1a6   :  { %4560 = vtanh.f32 %v303_v42  ;;  %v293_v48 = vmul.f32 %v287_v41, %v266_v45  ;;  %v306_v49 = vadd.f32 %v300_v44, %v294_v43  ;;  %v560_v43 = vld [vmem:[%s5970_s7 + $0x20] sm:$0xff] }
 0x1a7   :  { %4562 = vtanh.f32 %v304_v39  ;;  %v4061_v50 = vpop.f32.mrf.mxu1  ;;  %v561_v39 = vld [vmem:[%s5970_s7 + $0x28] sm:$0xff] }
 0x1a8   :  { %v305_v52 = vadd.f32 %v299_v46, %v293_v48  ;;  %v296_v53 = vmul.f32 %v4061_v50, %v290_v47  ;;  %v573_v46 = vld [vmem:[%s5971_s8 + $0x28] sm:$0xff]  ;;  %v572_v48 = vld [vmem:[%s5971_s8 + $0x20] sm:$0xff] }
 0x1a9   :  { %v276_v55 = vpop.f32.mrf.mxu1 }
 0x1aa   :  { %4564 = vtanh.f32 %v305_v52  ;;  %v295_v57 = vmul.f32 %v289_v51, %v276_v55  ;;  %v308_v58 = vadd.f32 %v302_v54, %v296_v53 }
 0x1ab   :  { %4566 = vtanh.f32 %v306_v49 }
 0x1ac   :  { %v307_v59 = vadd.f32 %v301_v56, %v295_v57 }
 0x1ae   :  { %4568 = vtanh.f32 %v307_v59 }
 0x1af   :  { %4570 = vtanh.f32 %v308_v58  ;;  %v3375_v58 = vld [vmem:[%s5969_s6 + $0x30] sm:$0xff] }
 0x1b3   :  { %v4877_v60 = vpop.eup %4560 }
 0x1b4   :  { %v4879_v61 = vpop.eup %4562  ;;  %4078 = vmatprep.mubr.msk.f32.mxu0 %vm329_vm2, %v4877_v60 }
 0x1b5   :  { %4079 = vmatmul.mubr.msk.f32.vlgmr.msra.gmra.mxu0 %vm329_vm2, %v4879_v61 }
 0x1b6   :  { %4109 = vmatpush3.msra.mxu0 %v3374_v14  ;;  %v3410_v14 = vld [vmem:[%s5966_s5 + $0xa8] sm:$0xff] }
 0x1b7   :  { %v4885_v62 = vpop.eup %4564  ;;  %4110 = vmatprep.subr.mxu0 %v3373_v15 }
 0x1b8   :  { %v4887_v63 = vpop.eup %4566  ;;  %4081 = vmatprep.mubr.msk.f32.mxu0 %vm329_vm2, %v4885_v62  ;;  %4111 = vmatpush3.msra.mxu0 %v3373_v15  ;;  %v3409_v15 = vld [vmem:[%s5966_s5 + $0xa0] sm:$0xff] }
 0x1b9   :  { %4082 = vmatmul.mubr.msk.f32.gmra.mxu0 %vm329_vm2, %v4887_v63  ;;  %4112 = vmatprep.subr.mxu0 %v3372_v16 }
 0x1ba   :  { %4113 = vmatpush3.msra.mxu0 %v3372_v16  ;;  %v3408_v16 = vld [vmem:[%s5966_s5 + $0x98] sm:$0xff] }
 0x1bb   :  { %v4893_v0 = vpop.eup %4568  ;;  %4114 = vmatprep.subr.mxu0 %v3371_v17 }
 0x1bc   :  { %v4895_v1 = vpop.eup %4570  ;;  %4084 = vmatprep.mubr.msk.f32.mxu0 %vm329_vm2, %v4893_v0  ;;  %4115 = vmatpush3.msra.mxu0 %v3371_v17  ;;  %v3407_v17 = vld [vmem:[%s5966_s5 + $0x90] sm:$0xff] }
 0x1bd   :  { %4085 = vmatmul.mubr.msk.f32.gmra.mxu0 %vm329_vm2, %v4895_v1  ;;  %4116 = vmatprep.subr.mxu0 %v3370_v18 }
 0x1be   :  { %4117 = vmatpush3.msra.mxu0 %v3370_v18  ;;  %v3406_v18 = vld [vmem:[%s5966_s5 + $0x88] sm:$0xff] }
 0x1bf   :  { %4118 = vmatprep.subr.mxu0 %v3369_v19 }
 0x1c0   :  { %4119 = vmatpush3.msra.mxu0 %v3369_v19  ;;  %v3405_v19 = vld [vmem:[%s5966_s5 + $0x80] sm:$0xff] }
 0x1c1   :  { %4120 = vmatprep.subr.mxu0 %v3368_v20 }
 0x1c2   :  { %4121 = vmatpush3.msra.mxu0 %v3368_v20  ;;  %v3394_v20 = vld [vmem:[%s5970_s7 + $0x38] sm:$0xff] }
 0x1c3   :  { %4122 = vmatprep.subr.mxu0 %v3367_v21 }
 0x1c4   :  { %4123 = vmatpush3.msra.mxu0 %v3367_v21 }
 0x275   :  { %v4080_v3 = vpop.f32.mrf.mxu0 }
 0x277   :  { %v414_v4 = vpop.f32.mrf.mxu0 }
 0x279   :  { %v4083_v5 = vpop.f32.mrf.mxu0 }
 0x27b   :  { %v424_v6 = vpop.f32.mrf.mxu0 }
 0x27d   :  { %v4086_v7 = vpop.f32.mrf.mxu0 }
 0x27e   :  { %4087 = vmatprep.subr.mxu1 %v4086_v7 }
 0x27f   :  { %v434_v8 = vpop.f32.mrf.mxu0  ;;  %4088 = vmatpush3.msra.mxu1 %v4086_v7  ;;  %v3376_v7 = vld [vmem:[%s5969_s6 + $0x38] sm:$0xff] }
 0x280   :  { %4089 = vmatprep.subr.mxu1 %v434_v8 }
 0x281   :  { %4090 = vmatpush3.msra.mxu1 %v434_v8  ;;  %v3377_v8 = vld [vmem:[%s5969_s6 + $0x40] sm:$0xff] }
 0x282   :  { %4091 = vmatprep.subr.mxu1 %v4083_v5 }
 0x283   :  { %4092 = vmatpush3.msra.mxu1 %v4083_v5 }
 0x284   :  { %4093 = vmatprep.subr.mxu1 %v424_v6 }
 0x285   :  { %4094 = vmatpush3.msra.mxu1 %v424_v6 }
 0x286   :  { %4095 = vmatprep.subr.mxu1 %v4080_v3 }
 0x287   :  { %4096 = vmatpush3.msra.mxu1 %v4080_v3 }
 0x288   :  { %4097 = vmatprep.subr.mxu1 %v414_v4 }
 0x289   :  { %4098 = vmatpush3.msra.mxu1 %v414_v4 }
 0x28a   :  { %4100 = vmatmul.mubr.msk.f32.vlgmr.msra.gmra.mxu1 %vm171_vm1, %v324_v9  ;;  %v3378_v9 = vld [vmem:[%s5969_s6 + $0x48] sm:$0xff] }
 0x28b   :  { %4102 = vmatprep.mubr.msk.f32.mxu1 %vm171_vm1, %v325_v10  ;;  %v3379_v10 = vld [vmem:[%s5969_s6 + $0x50] sm:$0xff] }
 0x28e   :  { %4103 = vmatmul.mubr.msk.f32.gmra.mxu1 %vm171_vm1, %v326_v11  ;;  %v3380_v11 = vld [vmem:[%s5969_s6 + $0x58] sm:$0xff] }
 0x28f   :  { %4105 = vmatprep.mubr.msk.f32.mxu1 %vm171_vm1, %v327_v12  ;;  %v3412_v12 = vld [vmem:[%s5966_s5 + $0xb8] sm:$0xff] }
 0x292   :  { %4106 = vmatmul.mubr.msk.f32.gmra.mxu1 %vm171_vm1, %v328_v13  ;;  %v3411_v13 = vld [vmem:[%s5966_s5 + $0xb0] sm:$0xff] }
 0x293   :  { %4145 = vmatprep.mubr.msk.f32.mxu1 %vm171_vm1, %v3375_v58 }
 0x34a   :  { %v4101_v23 = vpop.f32.mrf.mxu1 }
 0x34b   :  { %v563_v25 = vmul.f32 %v4101_v23, %v557_v22  ;;  %v3400_v22 = vld [vmem:[%s5971_s8 + $0x38] sm:$0xff]  ;;  %v3393_v23 = vld [vmem:[%s5970_s7 + $0x30] sm:$0xff] }
 0x34c   :  { %v527_v27 = vpop.f32.mrf.mxu1 }
 0x34d   :  { %v562_v30 = vmul.f32 %v556_v24, %v527_v27  ;;  %v575_v31 = vadd.f32 %v569_v26, %v563_v25  ;;  %v3399_v26 = vld [vmem:[%s5971_s8 + $0x30] sm:$0xff]  ;;  %v3396_v27 = vld [vmem:[%s5970_s7 + $0x48] sm:$0xff] }
 0x34e   :  { %v4104_v32 = vpop.f32.mrf.mxu1 }
 0x34f   :  { %v574_v34 = vadd.f32 %v568_v28, %v562_v30  ;;  %v565_v35 = vmul.f32 %v4104_v32, %v559_v29  ;;  %v3395_v32 = vld [vmem:[%s5970_s7 + $0x40] sm:$0xff] }
 0x350   :  { %v537_v37 = vpop.f32.mrf.mxu1 }
 0x351   :  { %4572 = vtanh.f32 %v574_v34  ;;  %v564_v40 = vmul.f32 %v558_v33, %v537_v37  ;;  %v577_v41 = vadd.f32 %v571_v36, %v565_v35  ;;  %v3401_v36 = vld [vmem:[%s5971_s8 + $0x40] sm:$0xff]  ;;  %v3398_v37 = vld [vmem:[%s5970_s7 + $0x58] sm:$0xff] }
 0x352   :  { %4574 = vtanh.f32 %v575_v31  ;;  %v4107_v42 = vpop.f32.mrf.mxu1  ;;  %v3402_v31 = vld [vmem:[%s5971_s8 + $0x48] sm:$0xff] }
 0x353   :  { %v576_v44 = vadd.f32 %v570_v38, %v564_v40  ;;  %v567_v45 = vmul.f32 %v4107_v42, %v561_v39  ;;  %v3397_v42 = vld [vmem:[%s5970_s7 + $0x50] sm:$0xff] }
 0x354   :  { %v547_v47 = vpop.f32.mrf.mxu1 }
 0x355   :  { %4576 = vtanh.f32 %v576_v44  ;;  %v566_v49 = vmul.f32 %v560_v43, %v547_v47  ;;  %v579_v50 = vadd.f32 %v573_v46, %v567_v45  ;;  %v3403_v46 = vld [vmem:[%s5971_s8 + $0x50] sm:$0xff] }
 0x356   :  { %4578 = vtanh.f32 %v577_v41  ;;  %v3404_v41 = vld [vmem:[%s5971_s8 + $0x58] sm:$0xff] }
 0x357   :  { %v578_v51 = vadd.f32 %v572_v48, %v566_v49 }
 0x359   :  { %4580 = vtanh.f32 %v578_v51 }
 0x35a   :  { %4582 = vtanh.f32 %v579_v50 }
 0x35e   :  { %v4573_v52 = vpop.eup %4572 }
 0x35f   :  { %v4575_v53 = vpop.eup %4574  ;;  %4124 = vmatprep.mubr.msk.f32.mxu0 %vm329_vm2, %v4573_v52 }
 0x360   :  { %4125 = vmatmul.mubr.msk.f32.vlgmr.msra.gmra.mxu0 %vm329_vm2, %v4575_v53 }
 0x362   :  { %v4577_v54 = vpop.eup %4576 }
 0x363   :  { %v4579_v55 = vpop.eup %4578  ;;  %4127 = vmatprep.mubr.msk.f32.mxu0 %vm329_vm2, %v4577_v54 }
 0x364   :  { %4128 = vmatmul.mubr.msk.f32.gmra.mxu0 %vm329_vm2, %v4579_v55 }
 0x366   :  { %v4581_v56 = vpop.eup %4580 }
 0x367   :  { %v4583_v57 = vpop.eup %4582  ;;  %4130 = vmatprep.mubr.msk.f32.mxu0 %vm329_vm2, %v4581_v56 }
 0x368   :  { %4131 = vmatmul.mubr.msk.f32.gmra.mxu0 %vm329_vm2, %v4583_v57 }
 0x420   :  { %v4126_v59 = vpop.f32.mrf.mxu0 }
 0x422   :  { %v686_v2 = vpop.f32.mrf.mxu0 }
 0x424   :  { %v4129_v3 = vpop.f32.mrf.mxu0 }
 0x426   :  { %v696_v4 = vpop.f32.mrf.mxu0 }
 0x428   :  { %v4132_v5 = vpop.f32.mrf.mxu0 }
 0x429   :  { %4133 = vmatprep.subr.mxu1 %v4132_v5 }
 0x42a   :  { %v706_v6 = vpop.f32.mrf.mxu0  ;;  %4134 = vmatpush3.msra.mxu1 %v4132_v5  ;;  %v3414_v5 = vld [vmem:[%s5969_s6 + $0x68] sm:$0xff] }
 0x42b   :  { %4135 = vmatprep.subr.mxu1 %v706_v6 }
 0x42c   :  { %4136 = vmatpush3.msra.mxu1 %v706_v6  ;;  %v3415_v6 = vld [vmem:[%s5969_s6 + $0x70] sm:$0xff] }
 0x42d   :  { %4137 = vmatprep.subr.mxu1 %v4129_v3 }
 0x42e   :  { %4138 = vmatpush3.msra.mxu1 %v4129_v3 }
 0x42f   :  { %4139 = vmatprep.subr.mxu1 %v696_v4 }
 0x430   :  { %4140 = vmatpush3.msra.mxu1 %v696_v4 }
 0x431   :  { %4141 = vmatprep.subr.mxu1 %v4126_v59 }
 0x432   :  { %4142 = vmatpush3.msra.mxu1 %v4126_v59 }
 0x433   :  { %4143 = vmatprep.subr.mxu1 %v686_v2 }
 0x434   :  { %4144 = vmatpush3.msra.mxu1 %v686_v2 }
 0x435   :  { %4146 = vmatmul.mubr.msk.f32.vlgmr.msra.gmra.mxu1 %vm171_vm1, %v3376_v7  ;;  %4154 = vmatprep.subr.mxu1 %v3412_v12  ;;  %v3416_v7 = vld [vmem:[%s5969_s6 + $0x78] sm:$0xff] }
 0x436   :  { %4148 = vmatprep.mubr.msk.f32.mxu1 %vm171_vm1, %v3377_v8  ;;  %4155 = vmatpush3.msra.mxu1 %v3412_v12  ;;  %v3417_v8 = vld [vmem:[%s5969_s6 + $0x80] sm:$0xff]  ;;  %v3448_v12 = vld [vmem:[%s5966_s5 + $0xe8] sm:$0xff] }
 0x437   :  { %4156 = vmatprep.subr.mxu1 %v3411_v13 }
 0x438   :  { %4157 = vmatpush3.msra.mxu1 %v3411_v13  ;;  %v3447_v13 = vld [vmem:[%s5966_s5 + $0xe0] sm:$0xff] }
 0x439   :  { %4149 = vmatmul.mubr.msk.f32.gmra.mxu1 %vm171_vm1, %v3378_v9  ;;  %4158 = vmatprep.subr.mxu1 %v3410_v14  ;;  %v3418_v9 = vld [vmem:[%s5969_s6 + $0x88] sm:$0xff] }
 0x43a   :  { %4151 = vmatprep.mubr.msk.f32.mxu1 %vm171_vm1, %v3379_v10  ;;  %4159 = vmatpush3.msra.mxu1 %v3410_v14  ;;  %v3450_v10 = vld [vmem:[%s5966_s5 + $0xf8] sm:$0xff] }
 0x43b   :  { %4160 = vmatprep.subr.mxu1 %v3409_v15  ;;  %v3446_v14 = vld [vmem:[%s5966_s5 + $0xd8] sm:$0xff] }
 0x43c   :  { %4161 = vmatpush3.msra.mxu1 %v3409_v15  ;;  %v3445_v15 = vld [vmem:[%s5966_s5 + $0xd0] sm:$0xff] }
 0x43d   :  { %4152 = vmatmul.mubr.msk.f32.gmra.mxu1 %vm171_vm1, %v3380_v11  ;;  %4162 = vmatprep.subr.mxu1 %v3408_v16  ;;  %v3449_v11 = vld [vmem:[%s5966_s5 + $0xf0] sm:$0xff] }
 0x43e   :  { %4163 = vmatpush3.msra.mxu1 %v3408_v16  ;;  %v3444_v16 = vld [vmem:[%s5966_s5 + $0xc8] sm:$0xff] }
 0x43f   :  { %4164 = vmatprep.subr.mxu1 %v3407_v17 }
 0x440   :  { %4165 = vmatpush3.msra.mxu1 %v3407_v17  ;;  %v3443_v17 = vld [vmem:[%s5966_s5 + $0xc0] sm:$0xff] }
 0x441   :  { %4166 = vmatprep.subr.mxu1 %v3406_v18 }
 0x442   :  { %4167 = vmatpush3.msra.mxu1 %v3406_v18  ;;  %v3432_v18 = vld [vmem:[%s5970_s7 + $0x68] sm:$0xff] }
 0x443   :  { %4168 = vmatprep.subr.mxu1 %v3405_v19 }
 0x444   :  { %4169 = vmatpush3.msra.mxu1 %v3405_v19 }
 0x4f5   :  { %v4147_v21 = vpop.f32.mrf.mxu1 }
 0x4f6   :  { %v836_v24 = vmul.f32 %v4147_v21, %v3394_v20  ;;  %v3431_v20 = vld [vmem:[%s5970_s7 + $0x60] sm:$0xff] }
 0x4f7   :  { %v799_v25 = vpop.f32.mrf.mxu1 }
 0x4f8   :  { %v849_v28 = vadd.f32 %v3400_v22, %v836_v24  ;;  %v835_v29 = vmul.f32 %v3393_v23, %v799_v25  ;;  %v3438_v22 = vld [vmem:[%s5971_s8 + $0x68] sm:$0xff]  ;;  %v3437_v24 = vld [vmem:[%s5971_s8 + $0x60] sm:$0xff]  ;;  %v3434_v25 = vld [vmem:[%s5970_s7 + $0x78] sm:$0xff] }
 0x4f9   :  { %v4150_v30 = vpop.f32.mrf.mxu1 }
 0x4fa   :  { %v848_v33 = vadd.f32 %v3399_v26, %v835_v29  ;;  %v838_v34 = vmul.f32 %v4150_v30, %v3396_v27  ;;  %4584 = vtanh.f32 %v849_v28  ;;  %v3433_v29 = vld [vmem:[%s5970_s7 + $0x70] sm:$0xff] }
 0x4fb   :  { %v809_v35 = vpop.f32.mrf.mxu1 }
 0x4fc   :  { %4586 = vtanh.f32 %v848_v33  ;;  %v851_v38 = vadd.f32 %v3402_v31, %v838_v34  ;;  %v837_v39 = vmul.f32 %v3395_v32, %v809_v35  ;;  %v3440_v32 = vld [vmem:[%s5971_s8 + $0x78] sm:$0xff]  ;;  %v3439_v34 = vld [vmem:[%s5971_s8 + $0x70] sm:$0xff]  ;;  %v3436_v35 = vld [vmem:[%s5970_s7 + $0x88] sm:$0xff] }
 0x4fd   :  { %v4153_v40 = vpop.f32.mrf.mxu1 }
 0x4fe   :  { %v850_v43 = vadd.f32 %v3401_v36, %v837_v39  ;;  %v840_v44 = vmul.f32 %v4153_v40, %v3398_v37  ;;  %4588 = vtanh.f32 %v851_v38  ;;  %v3435_v39 = vld [vmem:[%s5970_s7 + $0x80] sm:$0xff] }
 0x4ff   :  { %v819_v45 = vpop.f32.mrf.mxu1 }
 0x500   :  { %4590 = vtanh.f32 %v850_v43  ;;  %v853_v47 = vadd.f32 %v3404_v41, %v840_v44  ;;  %v839_v48 = vmul.f32 %v3397_v42, %v819_v45  ;;  %v3442_v42 = vld [vmem:[%s5971_s8 + $0x88] sm:$0xff]  ;;  %v3441_v44 = vld [vmem:[%s5971_s8 + $0x80] sm:$0xff] }
 0x502   :  { %v852_v49 = vadd.f32 %v3403_v46, %v839_v48  ;;  %4592 = vtanh.f32 %v853_v47 }
 0x504   :  { %4594 = vtanh.f32 %v852_v49 }
 0x507   :  { %v4585_v50 = vpop.eup %4584 }
 0x508   :  { %v5079_v53 = vadd.f32 %v4585_v50, %v4879_v61 }
 0x509   :  { %v4587_v51 = vpop.eup %4586 }
 0x50a   :  { %v5076_v52 = vadd.f32 %v4587_v51, %v4877_v60 }
 0x50b   :  { %v4589_v54 = vpop.eup %4588 }
 0x50c   :  { %4170 = vmatprep.mubr.msk.f32.mxu1 %vm329_vm2, %v5076_v52  ;;  %v5089_v57 = vadd.f32 %v4589_v54, %v4887_v63 }
 0x50d   :  { %v4591_v55 = vpop.eup %4590  ;;  %4171 = vmatmul.mubr.msk.f32.vlgmr.msra.gmra.mxu1 %vm329_vm2, %v5079_v53 }
 0x50e   :  { %v5086_v56 = vadd.f32 %v4591_v55, %v4885_v62  ;;  %v3413_v62 = vld [vmem:[%s5969_s6 + $0x60] sm:$0xff] }
 0x50f   :  { %v4593_v58 = vpop.eup %4592  ;;  %4191 = vmatprep.mubr.msk.f32.mxu0 %vm171_vm1, %v3413_v62 }
 0x510   :  { %4173 = vmatprep.mubr.msk.f32.mxu1 %vm329_vm2, %v5086_v56  ;;  %v5099_v59 = vadd.f32 %v4593_v58, %v4895_v1  ;;  %v3451_v58 = vld [vmem:[%s5969_s6 + $0x90] sm:$0xff] }
 0x511   :  { %v4595_v60 = vpop.eup %4594  ;;  %4174 = vmatmul.mubr.msk.f32.gmra.mxu1 %vm329_vm2, %v5089_v57 }
 0x512   :  { %v5096_v61 = vadd.f32 %v4595_v60, %v4893_v0 }
 0x514   :  { %4176 = vmatprep.mubr.msk.f32.mxu1 %vm329_vm2, %v5096_v61 }
 0x515   :  { %4177 = vmatmul.mubr.msk.f32.gmra.mxu1 %vm329_vm2, %v5099_v59 }
 0x516   :  { %4237 = vmatprep.mubr.msk.f32.mxu1 %vm171_vm1, %v3451_v58 }
 0x5cd   :  { %v4172_v63 = vpop.f32.mrf.mxu1 }
 0x5cf   :  { %v966_v2 = vpop.f32.mrf.mxu1 }
 0x5d1   :  { %v4175_v3 = vpop.f32.mrf.mxu1 }
 0x5d3   :  { %v976_v0 = vpop.f32.mrf.mxu1 }
 0x5d5   :  { %v4178_v4 = vpop.f32.mrf.mxu1 }
 0x5d6   :  { %4179 = vmatprep.subr.mxu0 %v4178_v4 }
 0x5d7   :  { %v986_v1 = vpop.f32.mrf.mxu1  ;;  %4180 = vmatpush3.msra.mxu0 %v4178_v4  ;;  %v3452_v4 = vld [vmem:[%s5969_s6 + $0x98] sm:$0xff] }
 0x5d8   :  { %4181 = vmatprep.subr.mxu0 %v986_v1 }
 0x5d9   :  { %4182 = vmatpush3.msra.mxu0 %v986_v1  ;;  %v3453_v1 = vld [vmem:[%s5969_s6 + $0xa0] sm:$0xff] }
 0x5da   :  { %4183 = vmatprep.subr.mxu0 %v4175_v3 }
 0x5db   :  { %4184 = vmatpush3.msra.mxu0 %v4175_v3 }
 0x5dc   :  { %4185 = vmatprep.subr.mxu0 %v976_v0 }
 0x5dd   :  { %4186 = vmatpush3.msra.mxu0 %v976_v0 }
 0x5de   :  { %4187 = vmatprep.subr.mxu0 %v4172_v63 }
 0x5df   :  { %4188 = vmatpush3.msra.mxu0 %v4172_v63 }
 0x5e0   :  { %4189 = vmatprep.subr.mxu0 %v966_v2 }
 0x5e1   :  { %4190 = vmatpush3.msra.mxu0 %v966_v2 }
 0x5e2   :  { %4192 = vmatmul.mubr.msk.f32.vlgmr.msra.gmra.mxu0 %vm171_vm1, %v3414_v5  ;;  %4200 = vmatprep.subr.mxu0 %v3450_v10  ;;  %v3454_v5 = vld [vmem:[%s5969_s6 + $0xa8] sm:$0xff] }
 0x5e3   :  { %4194 = vmatprep.mubr.msk.f32.mxu0 %vm171_vm1, %v3415_v6  ;;  %4201 = vmatpush3.msra.mxu0 %v3450_v10  ;;  %v3455_v6 = vld [vmem:[%s5969_s6 + $0xb0] sm:$0xff]  ;;  %v1425_v10 = vld [vmem:[%s5972_s9 + $0x28] sm:$0xff] }
 0x5e4   :  { %4202 = vmatprep.subr.mxu0 %v3449_v11 }
 0x5e5   :  { %4203 = vmatpush3.msra.mxu0 %v3449_v11  ;;  %v1424_v11 = vld [vmem:[%s5972_s9 + $0x20] sm:$0xff] }
 0x5e6   :  { %4195 = vmatmul.mubr.msk.f32.gmra.mxu0 %vm171_vm1, %v3416_v7  ;;  %4204 = vmatprep.subr.mxu0 %v3448_v12  ;;  %v3456_v7 = vld [vmem:[%s5969_s6 + $0xb8] sm:$0xff] }
 0x5e7   :  { %4197 = vmatprep.mubr.msk.f32.mxu0 %vm171_vm1, %v3417_v8  ;;  %4205 = vmatpush3.msra.mxu0 %v3448_v12  ;;  %v1427_v8 = vld [vmem:[%s5972_s9 + $0x38] sm:$0xff] }
 0x5e8   :  { %4206 = vmatprep.subr.mxu0 %v3447_v13  ;;  %v1423_v12 = vld [vmem:[%s5972_s9 + $0x18] sm:$0xff] }
 0x5e9   :  { %4207 = vmatpush3.msra.mxu0 %v3447_v13  ;;  %v1422_v13 = vld [vmem:[%s5972_s9 + $0x10] sm:$0xff] }
 0x5ea   :  { %4198 = vmatmul.mubr.msk.f32.gmra.mxu0 %vm171_vm1, %v3418_v9  ;;  %4208 = vmatprep.subr.mxu0 %v3446_v14  ;;  %v1426_v9 = vld [vmem:[%s5972_s9 + $0x30] sm:$0xff] }
 0x5eb   :  { %4209 = vmatpush3.msra.mxu0 %v3446_v14  ;;  %v1421_v14 = vld [vmem:[%s5972_s9 + $0x8] sm:$0xff] }
 0x5ec   :  { %4210 = vmatprep.subr.mxu0 %v3445_v15 }
 0x5ed   :  { %4211 = vmatpush3.msra.mxu0 %v3445_v15  ;;  %v1420_v15 = vld [vmem:[%s5972_s9] sm:$0xff] }
 0x5ee   :  { %4212 = vmatprep.subr.mxu0 %v3444_v16 }
 0x5ef   :  { %4213 = vmatpush3.msra.mxu0 %v3444_v16  ;;  %v3470_v16 = vld [vmem:[%s5970_s7 + $0x98] sm:$0xff] }
 0x5f0   :  { %4214 = vmatprep.subr.mxu0 %v3443_v17 }
 0x5f1   :  { %4215 = vmatpush3.msra.mxu0 %v3443_v17 }
 0x6a2   :  { %v4193_v19 = vpop.f32.mrf.mxu0 }
 0x6a3   :  { %v1116_v21 = vmul.f32 %v4193_v19, %v3432_v18  ;;  %v3476_v18 = vld [vmem:[%s5971_s8 + $0x98] sm:$0xff]  ;;  %v3469_v19 = vld [vmem:[%s5970_s7 + $0x90] sm:$0xff] }
 0x6a4   :  { %v1079_v23 = vpop.f32.mrf.mxu0 }
 0x6a5   :  { %v1115_v26 = vmul.f32 %v3431_v20, %v1079_v23  ;;  %v1129_v27 = vadd.f32 %v3438_v22, %v1116_v21  ;;  %v3475_v22 = vld [vmem:[%s5971_s8 + $0x90] sm:$0xff]  ;;  %v3472_v23 = vld [vmem:[%s5970_s7 + $0xa8] sm:$0xff] }
 0x6a6   :  { %v4196_v28 = vpop.f32.mrf.mxu0 }
 0x6a7   :  { %v1128_v30 = vadd.f32 %v3437_v24, %v1115_v26  ;;  %v1118_v31 = vmul.f32 %v4196_v28, %v3434_v25  ;;  %v3471_v28 = vld [vmem:[%s5970_s7 + $0xa0] sm:$0xff] }
 0x6a8   :  { %v1089_v33 = vpop.f32.mrf.mxu0 }
 0x6a9   :  { %4596 = vtanh.f32 %v1128_v30  ;;  %v1117_v36 = vmul.f32 %v3433_v29, %v1089_v33  ;;  %v1131_v37 = vadd.f32 %v3440_v32, %v1118_v31  ;;  %v3477_v32 = vld [vmem:[%s5971_s8 + $0xa0] sm:$0xff]  ;;  %v3474_v33 = vld [vmem:[%s5970_s7 + $0xb8] sm:$0xff] }
 0x6aa   :  { %4598 = vtanh.f32 %v1129_v27  ;;  %v4199_v38 = vpop.f32.mrf.mxu0  ;;  %v3478_v27 = vld [vmem:[%s5971_s8 + $0xa8] sm:$0xff] }
 0x6ab   :  { %v1130_v40 = vadd.f32 %v3439_v34, %v1117_v36  ;;  %v1120_v41 = vmul.f32 %v4199_v38, %v3436_v35  ;;  %v3473_v38 = vld [vmem:[%s5970_s7 + $0xb0] sm:$0xff] }
 0x6ac   :  { %v1099_v43 = vpop.f32.mrf.mxu0 }
 0x6ad   :  { %4600 = vtanh.f32 %v1130_v40  ;;  %v1119_v45 = vmul.f32 %v3435_v39, %v1099_v43  ;;  %v1133_v46 = vadd.f32 %v3442_v42, %v1120_v41  ;;  %v3479_v42 = vld [vmem:[%s5971_s8 + $0xb0] sm:$0xff] }
 0x6ae   :  { %4602 = vtanh.f32 %v1131_v37  ;;  %v3480_v37 = vld [vmem:[%s5971_s8 + $0xb8] sm:$0xff] }
 0x6af   :  { %v1132_v47 = vadd.f32 %v3441_v44, %v1119_v45 }
 0x6b1   :  { %4604 = vtanh.f32 %v1132_v47 }
 0x6b2   :  { %4606 = vtanh.f32 %v1133_v46 }
 0x6b6   :  { %v4597_v48 = vpop.eup %4596 }
 0x6b7   :  { %v4599_v49 = vpop.eup %4598  ;;  %4216 = vmatprep.mubr.msk.f32.mxu0 %vm329_vm2, %v4597_v48 }
 0x6b8   :  { %4217 = vmatmul.mubr.msk.f32.vlgmr.msra.gmra.mxu0 %vm329_vm2, %v4599_v49 }
 0x6ba   :  { %v4601_v50 = vpop.eup %4600 }
 0x6bb   :  { %v4603_v51 = vpop.eup %4602  ;;  %4219 = vmatprep.mubr.msk.f32.mxu0 %vm329_vm2, %v4601_v50 }
 0x6bc   :  { %4220 = vmatmul.mubr.msk.f32.gmra.mxu0 %vm329_vm2, %v4603_v51 }
 0x6be   :  { %v4605_v54 = vpop.eup %4604 }
 0x6bf   :  { %v4607_v55 = vpop.eup %4606  ;;  %4222 = vmatprep.mubr.msk.f32.mxu0 %vm329_vm2, %v4605_v54 }
 0x6c0   :  { %4223 = vmatmul.mubr.msk.f32.gmra.mxu0 %vm329_vm2, %v4607_v55 }
 0x778   :  { %v4218_v60 = vpop.f32.mrf.mxu0 }
 0x77a   :  { %v1240_v62 = vpop.f32.mrf.mxu0 }
 0x77c   :  { %v4221_v63 = vpop.f32.mrf.mxu0 }
 0x77e   :  { %v1250_v2 = vpop.f32.mrf.mxu0 }
 0x780   :  { %v4224_v3 = vpop.f32.mrf.mxu0 }
 0x781   :  { %4225 = vmatprep.subr.mxu1 %v4224_v3 }
 0x782   :  { %v1260_v0 = vpop.f32.mrf.mxu0  ;;  %4226 = vmatpush3.msra.mxu1 %v4224_v3 }
 0x783   :  { %4227 = vmatprep.subr.mxu1 %v1260_v0 }
 0x784   :  { %4228 = vmatpush3.msra.mxu1 %v1260_v0 }
 0x785   :  { %4229 = vmatprep.subr.mxu1 %v4221_v63 }
 0x786   :  { %4230 = vmatpush3.msra.mxu1 %v4221_v63 }
 0x787   :  { %4231 = vmatprep.subr.mxu1 %v1250_v2 }
 0x788   :  { %4232 = vmatpush3.msra.mxu1 %v1250_v2 }
 0x789   :  { %4233 = vmatprep.subr.mxu1 %v4218_v60 }
 0x78a   :  { %4234 = vmatpush3.msra.mxu1 %v4218_v60 }
 0x78b   :  { %4235 = vmatprep.subr.mxu1 %v1240_v62 }
 0x78c   :  { %4236 = vmatpush3.msra.mxu1 %v1240_v62 }
 0x78d   :  { %4238 = vmatmul.mubr.msk.f32.vlgmr.msra.gmra.mxu1 %vm171_vm1, %v3452_v4  ;;  %4246 = vmatprep.subr.mxu1 %v1427_v8  ;;  %v1430_v4 = vld [vmem:[%s5973_s10 + $0x10] sm:$0xff] }
 0x78e   :  { %4240 = vmatprep.mubr.msk.f32.mxu1 %vm171_vm1, %v3453_v1  ;;  %4247 = vmatpush3.msra.mxu1 %v1427_v8  ;;  %v3502_v1 = vld [vmem:[%s5963_s1 + $0x30] sm:$0xff]  ;;  %v3500_v8 = vld [vmem:[%s5963_s1 + $0x20] sm:$0xff] }
 0x78f   :  { %4248 = vmatprep.subr.mxu1 %v1426_v9 }
 0x790   :  { %4249 = vmatpush3.msra.mxu1 %v1426_v9  ;;  %v1433_v9 = vld [vmem:[%s5973_s10 + $0x28] sm:$0xff] }
 0x791   :  { %4241 = vmatmul.mubr.msk.f32.gmra.mxu1 %vm171_vm1, %v3454_v5  ;;  %4250 = vmatprep.subr.mxu1 %v1425_v10  ;;  %v1431_v5 = vld [vmem:[%s5973_s10 + $0x18] sm:$0xff] }
 0x792   :  { %4243 = vmatprep.mubr.msk.f32.mxu1 %vm171_vm1, %v3455_v6  ;;  %4251 = vmatpush3.msra.mxu1 %v1425_v10  ;;  %v3501_v6 = vld [vmem:[%s5963_s1 + $0x28] sm:$0xff]  ;;  %v3494_v10 = vld [vmem:[%s5964_s0 + $0x30] sm:$0xff] }
 0x793   :  { %4252 = vmatprep.subr.mxu1 %v1424_v11 }
 0x794   :  { %4253 = vmatpush3.msra.mxu1 %v1424_v11  ;;  %v3495_v11 = vld [vmem:[%s5964_s0 + $0x38] sm:$0xff] }
 0x795   :  { %4244 = vmatmul.mubr.msk.f32.gmra.mxu1 %vm171_vm1, %v3456_v7  ;;  %4254 = vmatprep.subr.mxu1 %v1423_v12  ;;  %v1432_v7 = vld [vmem:[%s5973_s10 + $0x20] sm:$0xff] }
 0x796   :  { %4255 = vmatpush3.msra.mxu1 %v1423_v12  ;;  %v3496_v12 = vld [vmem:[%s5964_s0 + $0x40] sm:$0xff] }
 0x797   :  { %4256 = vmatprep.subr.mxu1 %v1422_v13 }
 0x798   :  { %4257 = vmatpush3.msra.mxu1 %v1422_v13  ;;  %v3497_v13 = vld [vmem:[%s5964_s0 + $0x48] sm:$0xff] }
 0x799   :  { %4258 = vmatprep.subr.mxu1 %v1421_v14 }
 0x79a   :  { %4259 = vmatpush3.msra.mxu1 %v1421_v14  ;;  %v3498_v14 = vld [vmem:[%s5964_s0 + $0x50] sm:$0xff] }
 0x79b   :  { %4260 = vmatprep.subr.mxu1 %v1420_v15 }
 0x79c   :  { %4261 = vmatpush3.msra.mxu1 %v1420_v15  ;;  %v3499_v15 = vld [vmem:[%s5964_s0 + $0x58] sm:$0xff] }
 0x84d   :  { %v4239_v17 = vpop.f32.mrf.mxu1 }
 0x84e   :  { %v1390_v20 = vmul.f32 %v4239_v17, %v3470_v16  ;;  %v3504_v16 = vld [vmem:[%s5965_s2 + $0x30] sm:$0xff]  ;;  %v3487_v17 = vld [vmem:[%s5974_s11] ss:$0 sm:$0xff] }
 0x84f   :  { %v1353_v21 = vpop.f32.mrf.mxu1 }
 0x850   :  { %v1403_v24 = vadd.f32 %v3476_v18, %v1390_v20  ;;  %v1389_v25 = vmul.f32 %v3469_v19, %v1353_v21  ;;  %v4680_v18 = vld [vmem:[%s5964_s0 + $0x8] sm:$0xff]  ;;  %v4681_v21 = vld [vmem:[%s5964_s0] sm:$0xff] }
 0x851   :  { %v4242_v26 = vpop.f32.mrf.mxu1  ;;  %v1668_v19 = vmul.f32 2.0, %v4680_v18 }
 0x852   :  { %v1402_v29 = vadd.f32 %v3475_v22, %v1389_v25  ;;  %v1392_v30 = vmul.f32 %v4242_v26, %v3472_v23  ;;  %4608 = vtanh.f32 %v1403_v24  ;;  %v1667_v22 = vmul.f32 2.0, %v4681_v21 }
 0x853   :  { %v1363_v31 = vpop.f32.mrf.mxu1 }
 0x854   :  { %4610 = vtanh.f32 %v1402_v29  ;;  %v1405_v34 = vadd.f32 %v3478_v27, %v1392_v30  ;;  %v1391_v35 = vmul.f32 %v3471_v28, %v1363_v31  ;;  %v4682_v27 = vld [vmem:[%s5964_s0 + $0x18] sm:$0xff] }
 0x855   :  { %v4245_v36 = vpop.f32.mrf.mxu1  ;;  %v1670_v28 = vmul.f32 2.0, %v4682_v27  ;;  %v3533_v27 = vld [vmem:[%s5968_s4 + $0x58] sm:$0xff] }
 0x856   :  { %v1404_v39 = vadd.f32 %v3477_v32, %v1391_v35  ;;  %v1394_v40 = vmul.f32 %v4245_v36, %v3474_v33  ;;  %4612 = vtanh.f32 %v1405_v34  ;;  %v4683_v32 = vld [vmem:[%s5964_s0 + $0x10] sm:$0xff] }
 0x857   :  { %v1373_v41 = vpop.f32.mrf.mxu1  ;;  %v1669_v33 = vmul.f32 2.0, %v4683_v32 }
 0x858   :  { %4614 = vtanh.f32 %v1404_v39  ;;  %v1407_v43 = vadd.f32 %v3480_v37, %v1394_v40  ;;  %v1393_v44 = vmul.f32 %v3473_v38, %v1373_v41  ;;  %v4684_v37 = vld [vmem:[%s5964_s0 + $0x28] sm:$0xff] }
 0x859   :  { %v1672_v38 = vmul.f32 2.0, %v4684_v37 }
 0x85a   :  { %v1406_v45 = vadd.f32 %v3479_v42, %v1393_v44  ;;  %4616 = vtanh.f32 %v1407_v43  ;;  %v4685_v42 = vld [vmem:[%s5964_s0 + $0x20] sm:$0xff] }
 0x85b   :  { %v1671_v43 = vmul.f32 2.0, %v4685_v42 }
 0x85c   :  { %4618 = vtanh.f32 %v1406_v45 }
 0x85f   :  { %v4609_v46 = vpop.eup %4608 }
 0x860   :  { %v1415_v49 = vadd.f32 %v4609_v46, %v5079_v53 }
 0x861   :  { %v4611_v47 = vpop.eup %4610 }
 0x862   :  { %v1414_v48 = vadd.f32 %v4611_v47, %v5076_v52 }
 0x863   :  { %v4613_v50 = vpop.eup %4612 }
 0x864   :  { %4262 = vmatprep.mubr.msk.f32.mxu1 %vm329_vm2, %v1414_v48  ;;  %v1417_v55 = vadd.f32 %v4613_v50, %v5089_v57 }
 0x865   :  { %v4615_v51 = vpop.eup %4614  ;;  %4263 = vmatmul.mubr.msk.f32.vlgmr.msra.gmra.mxu1 %vm329_vm2, %v1415_v49 }
 0x866   :  { %v1416_v54 = vadd.f32 %v4615_v51, %v5086_v56  ;;  %v1428_v56 = vld [vmem:[%s5973_s10] sm:$0xff] }
 0x867   :  { %v4617_v58 = vpop.eup %4616  ;;  %4283 = vmatprep.mubr.msk.f32.mxu0 %vm171_vm1, %v1428_v56  ;;  %v3509_v56 = vld [vmem:[%s5965_s2 + $0x58] sm:$0xff] }
 0x868   :  { %4265 = vmatprep.mubr.msk.f32.mxu1 %vm329_vm2, %v1416_v54  ;;  %v1419_v53 = vadd.f32 %v4617_v58, %v5099_v59  ;;  %v3503_v59 = vld [vmem:[%s5963_s1 + $0x38] sm:$0xff] }
 0x869   :  { %v4619_v60 = vpop.eup %4618  ;;  %4266 = vmatmul.mubr.msk.f32.gmra.mxu1 %vm329_vm2, %v1417_v55  ;;  %v3505_v58 = vld [vmem:[%s5965_s2 + $0x38] sm:$0xff] }
 0x86a   :  { %v1418_v52 = vadd.f32 %v4619_v60, %v5096_v61  ;;  %v1429_v61 = vld [vmem:[%s5973_s10 + $0x8] sm:$0xff]  ;;  %v3506_v60 = vld [vmem:[%s5965_s2 + $0x40] sm:$0xff] }
 0x86c   :  { %4268 = vmatprep.mubr.msk.f32.mxu1 %vm329_vm2, %v1418_v52  ;;  %v3507_v52 = vld [vmem:[%s5965_s2 + $0x48] sm:$0xff] }
 0x86d   :  { %4269 = vmatmul.mubr.msk.f32.gmra.mxu1 %vm329_vm2, %v1419_v53  ;;  %v3508_v53 = vld [vmem:[%s5965_s2 + $0x50] sm:$0xff] }
 0x86e   :  { %4321 = vmatprep.mubr.msk.f32.mxu1 %vm171_vm1, %v3504_v16 }
 0x925   :  { %v4264_v57 = vpop.f32.mrf.mxu1 }
 0x927   :  { %v1518_v62 = vpop.f32.mrf.mxu1 }
 0x929   :  { %v4267_v63 = vpop.f32.mrf.mxu1 }
 0x92b   :  { %v1528_v2 = vpop.f32.mrf.mxu1 }
 0x92d   :  { %v4270_v3 = vpop.f32.mrf.mxu1 }
 0x92e   :  { %4271 = vmatprep.subr.mxu0 %v4270_v3 }
 0x92f   :  { %v1538_v0 = vpop.f32.mrf.mxu1  ;;  %4272 = vmatpush3.msra.mxu0 %v4270_v3  ;;  %v3537_v3 = vld [vmem:[%s5966_s5 + $0x118] sm:$0xff] }
 0x930   :  { %4273 = vmatprep.subr.mxu0 %v1538_v0 }
 0x931   :  { %4274 = vmatpush3.msra.mxu0 %v1538_v0  ;;  %v3536_v0 = vld [vmem:[%s5966_s5 + $0x110] sm:$0xff] }
 0x932   :  { %4275 = vmatprep.subr.mxu0 %v4267_v63 }
 0x933   :  { %4276 = vmatpush3.msra.mxu0 %v4267_v63  ;;  %v3539_v63 = vld [vmem:[%s5966_s5 + $0x128] sm:$0xff] }
 0x934   :  { %4277 = vmatprep.subr.mxu0 %v1528_v2 }
 0x935   :  { %4278 = vmatpush3.msra.mxu0 %v1528_v2  ;;  %v3538_v2 = vld [vmem:[%s5966_s5 + $0x120] sm:$0xff] }
 0x936   :  { %4279 = vmatprep.subr.mxu0 %v4264_v57 }
 0x937   :  { %4280 = vmatpush3.msra.mxu0 %v4264_v57  ;;  %v3541_v57 = vld [vmem:[%s5966_s5 + $0x138] sm:$0xff] }
 0x938   :  { %4281 = vmatprep.subr.mxu0 %v1518_v62 }
 0x939   :  { %4282 = vmatpush3.msra.mxu0 %v1518_v62  ;;  %v3540_v62 = vld [vmem:[%s5966_s5 + $0x130] sm:$0xff] }
 0x93a   :  { %4284 = vmatmul.mubr.msk.f32.vlgmr.msra.gmra.mxu0 %vm171_vm1, %v1429_v61  ;;  %4292 = vmatprep.subr.mxu0 %v3503_v59  ;;  %v3535_v61 = vld [vmem:[%s5966_s5 + $0x108] sm:$0xff] }
 0x93b   :  { %4293 = vmatpush3.msra.mxu0 %v3503_v59  ;;  %4286 = vmatprep.mubr.msk.f32.mxu0 %vm171_vm1, %v1430_v4  ;;  %v3534_v59 = vld [vmem:[%s5966_s5 + $0x100] sm:$0xff]  ;;  %v3523_v4 = vld [vmem:[%s5967_s3 + $0x38] sm:$0xff] }
 0x93c   :  { %4294 = vmatprep.subr.mxu0 %v3502_v1 }
 0x93d   :  { %4295 = vmatpush3.msra.mxu0 %v3502_v1 }
 0x93e   :  { %4287 = vmatmul.mubr.msk.f32.gmra.mxu0 %vm171_vm1, %v1431_v5  ;;  %4296 = vmatprep.subr.mxu0 %v3501_v6  ;;  %v3522_v5 = vld [vmem:[%s5967_s3 + $0x30] sm:$0xff] }
 0x93f   :  { %4289 = vmatprep.mubr.msk.f32.mxu0 %vm171_vm1, %v1432_v7  ;;  %4297 = vmatpush3.msra.mxu0 %v3501_v6  ;;  %v3529_v7 = vld [vmem:[%s5968_s4 + $0x38] sm:$0xff] }
 0x940   :  { %4298 = vmatprep.subr.mxu0 %v3500_v8 }
 0x941   :  { %4299 = vmatpush3.msra.mxu0 %v3500_v8 }
 0x942   :  { %4290 = vmatmul.mubr.msk.f32.gmra.mxu0 %vm171_vm1, %v1433_v9  ;;  %4330 = vmatprep.subr.mxu0 %v3541_v57  ;;  %v3528_v9 = vld [vmem:[%s5968_s4 + $0x30] sm:$0xff] }
 0x943   :  { %4300 = vmatprep.mubr.msk.f32.mxu0 %vm57_vm0, %v3494_v10  ;;  %v3525_v10 = vld [vmem:[%s5967_s3 + $0x48] sm:$0xff] }
 0x946   :  { %4301 = vmatmul.mubr.msk.f32.vlgmr.msra.gmra.mxu0 %vm57_vm0, %v3495_v11 }
 0x947   :  { %4303 = vmatprep.mubr.msk.f32.mxu0 %vm57_vm0, %v3496_v12  ;;  %4331 = vmatpush3.msra.mxu0 %v3541_v57  ;;  %v3561_v57 = vld [vmem:[%s5970_s7 + $0xc8] sm:$0xff] }
 0x948   :  { %4332 = vmatprep.subr.mxu0 %v3540_v62 }
 0x949   :  { %4333 = vmatpush3.msra.mxu0 %v3540_v62 }
 0x94a   :  { %4304 = vmatmul.mubr.msk.f32.gmra.mxu0 %vm57_vm0, %v3497_v13  ;;  %4334 = vmatprep.subr.mxu0 %v3539_v63 }
 0x94b   :  { %4306 = vmatprep.mubr.msk.f32.mxu0 %vm57_vm0, %v3498_v14  ;;  %4335 = vmatpush3.msra.mxu0 %v3539_v63  ;;  %v3524_v14 = vld [vmem:[%s5967_s3 + $0x40] sm:$0xff] }
 0x94c   :  { %4336 = vmatprep.subr.mxu0 %v3538_v2  ;;  %v3560_v63 = vld [vmem:[%s5970_s7 + $0xc0] sm:$0xff] }
 0x94d   :  { %4337 = vmatpush3.msra.mxu0 %v3538_v2 }
 0x94e   :  { %4307 = vmatmul.mubr.msk.f32.gmra.mxu0 %vm57_vm0, %v3499_v15  ;;  %4338 = vmatprep.subr.mxu0 %v3537_v3 }
 0x94f   :  { %4339 = vmatpush3.msra.mxu0 %v3537_v3  ;;  %v3567_v3 = vld [vmem:[%s5971_s8 + $0xc8] sm:$0xff] }
 0x950   :  { %4340 = vmatprep.subr.mxu0 %v3536_v0 }
 0x951   :  { %4341 = vmatpush3.msra.mxu0 %v3536_v0 }
 0x952   :  { %4342 = vmatprep.subr.mxu0 %v3535_v61 }
 0x953   :  { %4343 = vmatpush3.msra.mxu0 %v3535_v61  ;;  %v3566_v61 = vld [vmem:[%s5971_s8 + $0xc0] sm:$0xff] }
 0x954   :  { %4344 = vmatprep.subr.mxu0 %v3534_v59 }
 0x955   :  { %4345 = vmatpush3.msra.mxu0 %v3534_v59  ;;  %v3563_v59 = vld [vmem:[%s5970_s7 + $0xd8] sm:$0xff] }
 0x9fa   :  { %v4285_v20 = vpop.f32.mrf.mxu0 }
 0x9fb   :  { %v1644_v23 = vadd.f32 %v4285_v20, %v3487_v17  ;;  %v3527_v20 = vld [vmem:[%s5967_s3 + $0x58] sm:$0xff] }
 0x9fc   :  { %v1638_v24 = vpop.f32.mrf.mxu0 }
 0x9fd   :  { %v1674_v25 = vadd.f32 %v1668_v19, %v1644_v23  ;;  %v1639_v26 = vadd.f32 %v3487_v17, %v1638_v24  ;;  %v3530_v19 = vld [vmem:[%s5968_s4 + $0x40] sm:$0xff]  ;;  %v3526_v24 = vld [vmem:[%s5967_s3 + $0x50] sm:$0xff] }
 0x9fe   :  { %v4288_v29 = vpop.f32.mrf.mxu0 }
 0x9ff   :  { %1680 = vst.msk [vmem:[%s5975_s12 + $0x8] sm:$0xff] %vm57_vm0, %v1674_v25  ;;  %v1673_v30 = vadd.f32 %v1667_v22, %v1639_v26  ;;  %v1654_v31 = vadd.f32 %v4288_v29, %v3487_v17  ;;  %v3532_v29 = vld [vmem:[%s5968_s4 + $0x50] sm:$0xff] }
 0xa00   :  { %v1648_v34 = vpop.f32.mrf.mxu0 }
 0xa01   :  { %1679 = vst.msk [vmem:[%s5975_s12] sm:$0xff] %vm57_vm0, %v1673_v30  ;;  %v1676_v35 = vadd.f32 %v1670_v28, %v1654_v31  ;;  %v1649_v36 = vadd.f32 %v3487_v17, %v1648_v34 }
 0xa02   :  { %v4291_v39 = vpop.f32.mrf.mxu0 }
 0xa03   :  { %1682 = vst.msk [vmem:[%s5975_s12 + $0x18] sm:$0xff] %vm57_vm0, %v1676_v35  ;;  %v1675_v40 = vadd.f32 %v1669_v33, %v1649_v36  ;;  %v1664_v41 = vadd.f32 %v4291_v39, %v3487_v17  ;;  %v3542_v39 = vld [vmem:[%s5969_s6 + $0xc0] sm:$0xff] }
 0xa04   :  { %v1658_v44 = vpop.f32.mrf.mxu0 }
 0xa05   :  { %1681 = vst.msk [vmem:[%s5975_s12 + $0x10] sm:$0xff] %vm57_vm0, %v1675_v40  ;;  %v1678_v45 = vadd.f32 %v1672_v38, %v1664_v41  ;;  %v1659_v46 = vadd.f32 %v3487_v17, %v1658_v44  ;;  %v3531_v17 = vld [vmem:[%s5968_s4 + $0x48] sm:$0xff] }
 0xa06   :  { %v4302_v47 = vpop.f32.mrf.mxu0 }
 0xa07   :  { %1684 = vst.msk [vmem:[%s5975_s12 + $0x28] sm:$0xff] %vm57_vm0, %v1678_v45  ;;  %v1677_v48 = vadd.f32 %v1671_v43, %v1659_v46  ;;  %v3543_v46 = vld [vmem:[%s5969_s6 + $0xc8] sm:$0xff] }
 0xa08   :  { %v1788_v49 = vpop.f32.mrf.mxu0 }
 0xa09   :  { %1683 = vst.msk [vmem:[%s5975_s12 + $0x20] sm:$0xff] %vm57_vm0, %v1677_v48  ;;  %v3545_v48 = vld [vmem:[%s5969_s6 + $0xd8] sm:$0xff] }
 0xa0a   :  { %v4305_v50 = vpop.f32.mrf.mxu0 }
 0xa0c   :  { %v1798_v51 = vpop.f32.mrf.mxu0 }
 0xa0e   :  { %v4308_v54 = vpop.f32.mrf.mxu0 }
 0xa0f   :  { %4309 = vmatprep.subr.mxu1 %v4308_v54 }
 0xa10   :  { %v1808_v55 = vpop.f32.mrf.mxu0  ;;  %4310 = vmatpush3.msra.mxu1 %v4308_v54  ;;  %v3578_v54 = vld [vmem:[%s5966_s5 + $0x170] sm:$0xff] }
 0xa11   :  { %4311 = vmatprep.subr.mxu1 %v1808_v55 }
 0xa12   :  { %4312 = vmatpush3.msra.mxu1 %v1808_v55  ;;  %v3577_v55 = vld [vmem:[%s5966_s5 + $0x168] sm:$0xff] }
 0xa13   :  { %4313 = vmatprep.subr.mxu1 %v4305_v50 }
 0xa14   :  { %4314 = vmatpush3.msra.mxu1 %v4305_v50  ;;  %v3547_v50 = vld [vmem:[%s5969_s6 + $0xe8] sm:$0xff] }
 0xa15   :  { %4315 = vmatprep.subr.mxu1 %v1798_v51 }
 0xa16   :  { %4316 = vmatpush3.msra.mxu1 %v1798_v51  ;;  %v3579_v51 = vld [vmem:[%s5966_s5 + $0x178] sm:$0xff] }
 0xa17   :  { %4317 = vmatprep.subr.mxu1 %v4302_v47 }
 0xa18   :  { %4318 = vmatpush3.msra.mxu1 %v4302_v47  ;;  %v3544_v47 = vld [vmem:[%s5969_s6 + $0xd0] sm:$0xff] }
 0xa19   :  { %4319 = vmatprep.subr.mxu1 %v1788_v49 }
 0xa1a   :  { %4320 = vmatpush3.msra.mxu1 %v1788_v49  ;;  %v3546_v49 = vld [vmem:[%s5969_s6 + $0xe0] sm:$0xff] }
 0xa1b   :  { %4322 = vmatmul.mubr.msk.f32.vlgmr.msra.gmra.mxu1 %vm171_vm1, %v3505_v58  ;;  %v3576_v58 = vld [vmem:[%s5966_s5 + $0x160] sm:$0xff] }
 0xa1c   :  { %4324 = vmatprep.mubr.msk.f32.mxu1 %vm171_vm1, %v3506_v60  ;;  %v3575_v60 = vld [vmem:[%s5966_s5 + $0x158] sm:$0xff] }
 0xa1f   :  { %4325 = vmatmul.mubr.msk.f32.gmra.mxu1 %vm171_vm1, %v3507_v52  ;;  %v3574_v52 = vld [vmem:[%s5966_s5 + $0x150] sm:$0xff] }
 0xa20   :  { %4327 = vmatprep.mubr.msk.f32.mxu1 %vm171_vm1, %v3508_v53  ;;  %v3573_v53 = vld [vmem:[%s5966_s5 + $0x148] sm:$0xff] }
 0xa23   :  { %4328 = vmatmul.mubr.msk.f32.gmra.mxu1 %vm171_vm1, %v3509_v56  ;;  %v3572_v56 = vld [vmem:[%s5966_s5 + $0x140] sm:$0xff] }
 0xa24   :  { %4367 = vmatprep.mubr.msk.f32.mxu1 %vm171_vm1, %v3542_v39 }
 0xadb   :  { %v4323_v1 = vpop.f32.mrf.mxu1 }
 0xadc   :  { %v1938_v6 = vmul.f32 %v4323_v1, %v3523_v4 }
 0xadd   :  { %v1901_v8 = vpop.f32.mrf.mxu1 }
 0xade   :  { %v1937_v11 = vmul.f32 %v3522_v5, %v1901_v8  ;;  %v1951_v12 = vadd.f32 %v3529_v7, %v1938_v6  ;;  %v3562_v6 = vld [vmem:[%s5970_s7 + $0xd0] sm:$0xff] }
 0xadf   :  { %v4326_v13 = vpop.f32.mrf.mxu1 }
 0xae0   :  { %v1950_v15 = vadd.f32 %v3528_v9, %v1937_v11  ;;  %v1940_v16 = vmul.f32 %v4326_v13, %v3525_v10  ;;  %v3569_v9 = vld [vmem:[%s5971_s8 + $0xd8] sm:$0xff]  ;;  %v3568_v11 = vld [vmem:[%s5971_s8 + $0xd0] sm:$0xff] }
 0xae1   :  { %v1911_v18 = vpop.f32.mrf.mxu1 }
 0xae2   :  { %4620 = vtanh.f32 %v1950_v15  ;;  %v1939_v21 = vmul.f32 %v3524_v14, %v1911_v18  ;;  %v1953_v22 = vadd.f32 %v3531_v17, %v1940_v16  ;;  %v3564_v16 = vld [vmem:[%s5970_s7 + $0xe0] sm:$0xff] }
 0xae3   :  { %4622 = vtanh.f32 %v1951_v12  ;;  %v4329_v23 = vpop.f32.mrf.mxu1  ;;  %v3565_v12 = vld [vmem:[%s5970_s7 + $0xe8] sm:$0xff] }
 0xae4   :  { %v1952_v25 = vadd.f32 %v3530_v19, %v1939_v21  ;;  %v1942_v26 = vmul.f32 %v4329_v23, %v3527_v20  ;;  %v3571_v19 = vld [vmem:[%s5971_s8 + $0xe8] sm:$0xff]  ;;  %v3570_v21 = vld [vmem:[%s5971_s8 + $0xe0] sm:$0xff] }
 0xae5   :  { %v1921_v28 = vpop.f32.mrf.mxu1 }
 0xae6   :  { %4624 = vtanh.f32 %v1952_v25  ;;  %v1941_v30 = vmul.f32 %v3526_v24, %v1921_v28  ;;  %v1955_v31 = vadd.f32 %v3533_v27, %v1942_v26 }
 0xae7   :  { %4626 = vtanh.f32 %v1953_v22 }
 0xae8   :  { %v1954_v32 = vadd.f32 %v3532_v29, %v1941_v30 }
 0xaea   :  { %4628 = vtanh.f32 %v1954_v32 }
 0xaeb   :  { %4630 = vtanh.f32 %v1955_v31  ;;  %v3580_v31 = vld [vmem:[%s5969_s6 + $0xf0] sm:$0xff] }
 0xaef   :  { %v5480_v33 = vpop.eup %4620 }
 0xaf0   :  { %v5482_v34 = vpop.eup %4622  ;;  %4346 = vmatprep.mubr.msk.f32.mxu0 %vm329_vm2, %v5480_v33 }
 0xaf1   :  { %4347 = vmatmul.mubr.msk.f32.vlgmr.msra.gmra.mxu0 %vm329_vm2, %v5482_v34 }
 0xaf3   :  { %v5488_v35 = vpop.eup %4624 }
 0xaf4   :  { %v5490_v36 = vpop.eup %4626  ;;  %4349 = vmatprep.mubr.msk.f32.mxu0 %vm329_vm2, %v5488_v35 }
 0xaf5   :  { %4350 = vmatmul.mubr.msk.f32.gmra.mxu0 %vm329_vm2, %v5490_v36 }
 0xaf7   :  { %v5496_v37 = vpop.eup %4628 }
 0xaf8   :  { %v5498_v38 = vpop.eup %4630  ;;  %4352 = vmatprep.mubr.msk.f32.mxu0 %vm329_vm2, %v5496_v37 }
 0xaf9   :  { %4353 = vmatmul.mubr.msk.f32.gmra.mxu0 %vm329_vm2, %v5498_v38 }
 0xafa   :  { %4413 = vmatprep.mubr.msk.f32.mxu0 %vm171_vm1, %v3580_v31 }
 0xbb1   :  { %v4348_v40 = vpop.f32.mrf.mxu0 }
 0xbb3   :  { %v2062_v41 = vpop.f32.mrf.mxu0 }
 0xbb5   :  { %v4351_v42 = vpop.f32.mrf.mxu0 }
 0xbb7   :  { %v2072_v43 = vpop.f32.mrf.mxu0 }
 0xbb9   :  { %v4354_v44 = vpop.f32.mrf.mxu0 }
 0xbba   :  { %4355 = vmatprep.subr.mxu1 %v4354_v44 }
 0xbbb   :  { %v2082_v45 = vpop.f32.mrf.mxu0  ;;  %4356 = vmatpush3.msra.mxu1 %v4354_v44  ;;  %v3581_v44 = vld [vmem:[%s5969_s6 + $0xf8] sm:$0xff] }
 0xbbc   :  { %4357 = vmatprep.subr.mxu1 %v2082_v45 }
 0xbbd   :  { %4358 = vmatpush3.msra.mxu1 %v2082_v45  ;;  %v3582_v45 = vld [vmem:[%s5969_s6 + $0x100] sm:$0xff] }
 0xbbe   :  { %4359 = vmatprep.subr.mxu1 %v4351_v42 }
 0xbbf   :  { %4360 = vmatpush3.msra.mxu1 %v4351_v42 }
 0xbc0   :  { %4361 = vmatprep.subr.mxu1 %v2072_v43 }
 0xbc1   :  { %4362 = vmatpush3.msra.mxu1 %v2072_v43 }
 0xbc2   :  { %4363 = vmatprep.subr.mxu1 %v4348_v40 }
 0xbc3   :  { %4364 = vmatpush3.msra.mxu1 %v4348_v40 }
 0xbc4   :  { %4365 = vmatprep.subr.mxu1 %v2062_v41 }
 0xbc5   :  { %4366 = vmatpush3.msra.mxu1 %v2062_v41 }
 0xbc6   :  { %4368 = vmatmul.mubr.msk.f32.vlgmr.msra.gmra.mxu1 %vm171_vm1, %v3543_v46  ;;  %4376 = vmatprep.subr.mxu1 %v3579_v51  ;;  %v3583_v46 = vld [vmem:[%s5969_s6 + $0x108] sm:$0xff] }
 0xbc7   :  { %4370 = vmatprep.mubr.msk.f32.mxu1 %vm171_vm1, %v3544_v47  ;;  %4377 = vmatpush3.msra.mxu1 %v3579_v51  ;;  %v3584_v47 = vld [vmem:[%s5969_s6 + $0x110] sm:$0xff]  ;;  %v3615_v51 = vld [vmem:[%s5966_s5 + $0x1a8] sm:$0xff] }
 0xbc8   :  { %4378 = vmatprep.subr.mxu1 %v3578_v54 }
 0xbc9   :  { %4379 = vmatpush3.msra.mxu1 %v3578_v54  ;;  %v3614_v54 = vld [vmem:[%s5966_s5 + $0x1a0] sm:$0xff] }
 0xbca   :  { %4371 = vmatmul.mubr.msk.f32.gmra.mxu1 %vm171_vm1, %v3545_v48  ;;  %4380 = vmatprep.subr.mxu1 %v3577_v55  ;;  %v3585_v48 = vld [vmem:[%s5969_s6 + $0x118] sm:$0xff] }
 0xbcb   :  { %4373 = vmatprep.mubr.msk.f32.mxu1 %vm171_vm1, %v3546_v49  ;;  %4381 = vmatpush3.msra.mxu1 %v3577_v55  ;;  %v3617_v49 = vld [vmem:[%s5966_s5 + $0x1b8] sm:$0xff] }
 0xbcc   :  { %4382 = vmatprep.subr.mxu1 %v3576_v58  ;;  %v3613_v55 = vld [vmem:[%s5966_s5 + $0x198] sm:$0xff] }
 0xbcd   :  { %4383 = vmatpush3.msra.mxu1 %v3576_v58  ;;  %v3612_v58 = vld [vmem:[%s5966_s5 + $0x190] sm:$0xff] }
 0xbce   :  { %4374 = vmatmul.mubr.msk.f32.gmra.mxu1 %vm171_vm1, %v3547_v50  ;;  %4384 = vmatprep.subr.mxu1 %v3575_v60  ;;  %v3616_v50 = vld [vmem:[%s5966_s5 + $0x1b0] sm:$0xff] }
 0xbcf   :  { %4385 = vmatpush3.msra.mxu1 %v3575_v60  ;;  %v3611_v60 = vld [vmem:[%s5966_s5 + $0x188] sm:$0xff] }
 0xbd0   :  { %4386 = vmatprep.subr.mxu1 %v3574_v52 }
 0xbd1   :  { %4387 = vmatpush3.msra.mxu1 %v3574_v52  ;;  %v3610_v52 = vld [vmem:[%s5966_s5 + $0x180] sm:$0xff] }
 0xbd2   :  { %4388 = vmatprep.subr.mxu1 %v3573_v53 }
 0xbd3   :  { %4389 = vmatpush3.msra.mxu1 %v3573_v53  ;;  %v3599_v53 = vld [vmem:[%s5970_s7 + $0xf8] sm:$0xff] }
 0xbd4   :  { %4390 = vmatprep.subr.mxu1 %v3572_v56 }
 0xbd5   :  { %4391 = vmatpush3.msra.mxu1 %v3572_v56 }
 0xc86   :  { %v4369_v62 = vpop.f32.mrf.mxu1 }
 0xc87   :  { %v2212_v2 = vmul.f32 %v4369_v62, %v3561_v57  ;;  %v3605_v57 = vld [vmem:[%s5971_s8 + $0xf8] sm:$0xff]  ;;  %v3598_v62 = vld [vmem:[%s5970_s7 + $0xf0] sm:$0xff] }
 0xc88   :  { %v2175_v0 = vpop.f32.mrf.mxu1 }
 0xc89   :  { %v2211_v4 = vmul.f32 %v3560_v63, %v2175_v0  ;;  %v2225_v1 = vadd.f32 %v3567_v3, %v2212_v2  ;;  %v3604_v3 = vld [vmem:[%s5971_s8 + $0xf0] sm:$0xff]  ;;  %v3601_v0 = vld [vmem:[%s5970_s7 + $0x108] sm:$0xff] }
 0xc8a   :  { %v4372_v5 = vpop.f32.mrf.mxu1 }
 0xc8b   :  { %v2224_v7 = vadd.f32 %v3566_v61, %v2211_v4  ;;  %v2214_v8 = vmul.f32 %v4372_v5, %v3563_v59  ;;  %v3600_v5 = vld [vmem:[%s5970_s7 + $0x100] sm:$0xff] }
 0xc8c   :  { %v2185_v10 = vpop.f32.mrf.mxu1 }
 0xc8d   :  { %4632 = vtanh.f32 %v2224_v7  ;;  %v2213_v13 = vmul.f32 %v3562_v6, %v2185_v10  ;;  %v2227_v14 = vadd.f32 %v3569_v9, %v2214_v8  ;;  %v3606_v9 = vld [vmem:[%s5971_s8 + $0x100] sm:$0xff]  ;;  %v3603_v10 = vld [vmem:[%s5970_s7 + $0x118] sm:$0xff] }
 0xc8e   :  { %4634 = vtanh.f32 %v2225_v1  ;;  %v4375_v15 = vpop.f32.mrf.mxu1  ;;  %v3607_v1 = vld [vmem:[%s5971_s8 + $0x108] sm:$0xff] }
 0xc8f   :  { %v2226_v17 = vadd.f32 %v3568_v11, %v2213_v13  ;;  %v2216_v18 = vmul.f32 %v4375_v15, %v3565_v12  ;;  %v3602_v15 = vld [vmem:[%s5970_s7 + $0x110] sm:$0xff] }
 0xc90   :  { %v2195_v20 = vpop.f32.mrf.mxu1 }
 0xc91   :  { %4636 = vtanh.f32 %v2226_v17  ;;  %v2215_v22 = vmul.f32 %v3564_v16, %v2195_v20  ;;  %v2229_v23 = vadd.f32 %v3571_v19, %v2216_v18  ;;  %v3608_v19 = vld [vmem:[%s5971_s8 + $0x110] sm:$0xff] }
 0xc92   :  { %4638 = vtanh.f32 %v2227_v14  ;;  %v3609_v14 = vld [vmem:[%s5971_s8 + $0x118] sm:$0xff] }
 0xc93   :  { %v2228_v24 = vadd.f32 %v3570_v21, %v2215_v22 }
 0xc95   :  { %4640 = vtanh.f32 %v2228_v24 }
 0xc96   :  { %4642 = vtanh.f32 %v2229_v23 }
 0xc9a   :  { %v4633_v25 = vpop.eup %4632 }
 0xc9b   :  { %v4635_v26 = vpop.eup %4634  ;;  %4392 = vmatprep.mubr.msk.f32.mxu1 %vm329_vm2, %v4633_v25 }
 0xc9c   :  { %4393 = vmatmul.mubr.msk.f32.vlgmr.msra.gmra.mxu1 %vm329_vm2, %v4635_v26 }
 0xc9e   :  { %v4637_v27 = vpop.eup %4636 }
 0xc9f   :  { %v4639_v28 = vpop.eup %4638  ;;  %4395 = vmatprep.mubr.msk.f32.mxu1 %vm329_vm2, %v4637_v27 }
 0xca0   :  { %4396 = vmatmul.mubr.msk.f32.gmra.mxu1 %vm329_vm2, %v4639_v28 }
 0xca2   :  { %v4641_v29 = vpop.eup %4640 }
 0xca3   :  { %v4643_v30 = vpop.eup %4642  ;;  %4398 = vmatprep.mubr.msk.f32.mxu1 %vm329_vm2, %v4641_v29 }
 0xca4   :  { %4399 = vmatmul.mubr.msk.f32.gmra.mxu1 %vm329_vm2, %v4643_v30 }
 0xd5c   :  { %v4394_v32 = vpop.f32.mrf.mxu1 }
 0xd5e   :  { %v2336_v39 = vpop.f32.mrf.mxu1 }
 0xd60   :  { %v4397_v40 = vpop.f32.mrf.mxu1 }
 0xd62   :  { %v2346_v41 = vpop.f32.mrf.mxu1 }
 0xd64   :  { %v4400_v42 = vpop.f32.mrf.mxu1 }
 0xd65   :  { %4401 = vmatprep.subr.mxu0 %v4400_v42 }
 0xd66   :  { %v2356_v43 = vpop.f32.mrf.mxu1  ;;  %4402 = vmatpush3.msra.mxu0 %v4400_v42  ;;  %v3619_v42 = vld [vmem:[%s5969_s6 + $0x128] sm:$0xff] }
 0xd67   :  { %4403 = vmatprep.subr.mxu0 %v2356_v43 }
 0xd68   :  { %4404 = vmatpush3.msra.mxu0 %v2356_v43  ;;  %v3620_v43 = vld [vmem:[%s5969_s6 + $0x130] sm:$0xff] }
 0xd69   :  { %4405 = vmatprep.subr.mxu0 %v4397_v40 }
 0xd6a   :  { %4406 = vmatpush3.msra.mxu0 %v4397_v40 }
 0xd6b   :  { %4407 = vmatprep.subr.mxu0 %v2346_v41 }
 0xd6c   :  { %4408 = vmatpush3.msra.mxu0 %v2346_v41 }
 0xd6d   :  { %4409 = vmatprep.subr.mxu0 %v4394_v32 }
 0xd6e   :  { %4410 = vmatpush3.msra.mxu0 %v4394_v32 }
 0xd6f   :  { %4411 = vmatprep.subr.mxu0 %v2336_v39 }
 0xd70   :  { %4412 = vmatpush3.msra.mxu0 %v2336_v39 }
 0xd71   :  { %4414 = vmatmul.mubr.msk.f32.vlgmr.msra.gmra.mxu0 %vm171_vm1, %v3581_v44  ;;  %4422 = vmatprep.subr.mxu0 %v3617_v49  ;;  %v3621_v44 = vld [vmem:[%s5969_s6 + $0x138] sm:$0xff] }
 0xd72   :  { %4416 = vmatprep.mubr.msk.f32.mxu0 %vm171_vm1, %v3582_v45  ;;  %4423 = vmatpush3.msra.mxu0 %v3617_v49  ;;  %v3622_v45 = vld [vmem:[%s5969_s6 + $0x140] sm:$0xff]  ;;  %v3653_v49 = vld [vmem:[%s5966_s5 + $0x1e8] sm:$0xff] }
 0xd73   :  { %4424 = vmatprep.subr.mxu0 %v3616_v50 }
 0xd74   :  { %4425 = vmatpush3.msra.mxu0 %v3616_v50  ;;  %v3652_v50 = vld [vmem:[%s5966_s5 + $0x1e0] sm:$0xff] }
 0xd75   :  { %4417 = vmatmul.mubr.msk.f32.gmra.mxu0 %vm171_vm1, %v3583_v46  ;;  %4426 = vmatprep.subr.mxu0 %v3615_v51  ;;  %v3623_v46 = vld [vmem:[%s5969_s6 + $0x148] sm:$0xff] }
 0xd76   :  { %4419 = vmatprep.mubr.msk.f32.mxu0 %vm171_vm1, %v3584_v47  ;;  %4427 = vmatpush3.msra.mxu0 %v3615_v51  ;;  %v3655_v47 = vld [vmem:[%s5966_s5 + $0x1f8] sm:$0xff] }
 0xd77   :  { %4428 = vmatprep.subr.mxu0 %v3614_v54  ;;  %v3651_v51 = vld [vmem:[%s5966_s5 + $0x1d8] sm:$0xff] }
 0xd78   :  { %4429 = vmatpush3.msra.mxu0 %v3614_v54  ;;  %v3650_v54 = vld [vmem:[%s5966_s5 + $0x1d0] sm:$0xff] }
 0xd79   :  { %4420 = vmatmul.mubr.msk.f32.gmra.mxu0 %vm171_vm1, %v3585_v48  ;;  %4430 = vmatprep.subr.mxu0 %v3613_v55  ;;  %v3654_v48 = vld [vmem:[%s5966_s5 + $0x1f0] sm:$0xff] }
 0xd7a   :  { %4431 = vmatpush3.msra.mxu0 %v3613_v55  ;;  %v3649_v55 = vld [vmem:[%s5966_s5 + $0x1c8] sm:$0xff] }
 0xd7b   :  { %4432 = vmatprep.subr.mxu0 %v3612_v58 }
 0xd7c   :  { %4433 = vmatpush3.msra.mxu0 %v3612_v58  ;;  %v3648_v58 = vld [vmem:[%s5966_s5 + $0x1c0] sm:$0xff] }
 0xd7d   :  { %4434 = vmatprep.subr.mxu0 %v3611_v60 }
 0xd7e   :  { %4435 = vmatpush3.msra.mxu0 %v3611_v60  ;;  %v3637_v60 = vld [vmem:[%s5970_s7 + $0x128] sm:$0xff] }
 0xd7f   :  { %4436 = vmatprep.subr.mxu0 %v3610_v52 }
 0xd80   :  { %4437 = vmatpush3.msra.mxu0 %v3610_v52 }
 0xe31   :  { %v4415_v56 = vpop.f32.mrf.mxu0 }
 0xe32   :  { %v2486_v63 = vmul.f32 %v4415_v56, %v3599_v53  ;;  %v3636_v53 = vld [vmem:[%s5970_s7 + $0x120] sm:$0xff] }
 0xe33   :  { %v2449_v2 = vpop.f32.mrf.mxu0 }
 0xe34   :  { %v2499_v61 = vadd.f32 %v3605_v57, %v2486_v63  ;;  %v2485_v59 = vmul.f32 %v3598_v62, %v2449_v2  ;;  %v3643_v57 = vld [vmem:[%s5971_s8 + $0x128] sm:$0xff]  ;;  %v3642_v63 = vld [vmem:[%s5971_s8 + $0x120] sm:$0xff]  ;;  %v3639_v2 = vld [vmem:[%s5970_s7 + $0x138] sm:$0xff] }
 0xe35   :  { %v4418_v4 = vpop.f32.mrf.mxu0 }
 0xe36   :  { %v2498_v6 = vadd.f32 %v3604_v3, %v2485_v59  ;;  %v2488_v7 = vmul.f32 %v4418_v4, %v3601_v0  ;;  %4644 = vtanh.f32 %v2499_v61  ;;  %v3638_v59 = vld [vmem:[%s5970_s7 + $0x130] sm:$0xff] }
 0xe37   :  { %v2459_v8 = vpop.f32.mrf.mxu0 }
 0xe38   :  { %4646 = vtanh.f32 %v2498_v6  ;;  %v2501_v11 = vadd.f32 %v3607_v1, %v2488_v7  ;;  %v2487_v12 = vmul.f32 %v3600_v5, %v2459_v8  ;;  %v3645_v5 = vld [vmem:[%s5971_s8 + $0x138] sm:$0xff]  ;;  %v3644_v7 = vld [vmem:[%s5971_s8 + $0x130] sm:$0xff]  ;;  %v3641_v8 = vld [vmem:[%s5970_s7 + $0x148] sm:$0xff] }
 0xe39   :  { %v4421_v13 = vpop.f32.mrf.mxu0 }
 0xe3a   :  { %v2500_v16 = vadd.f32 %v3606_v9, %v2487_v12  ;;  %v2490_v17 = vmul.f32 %v4421_v13, %v3603_v10  ;;  %4648 = vtanh.f32 %v2501_v11  ;;  %v3640_v12 = vld [vmem:[%s5970_s7 + $0x140] sm:$0xff] }
 0xe3b   :  { %v2469_v18 = vpop.f32.mrf.mxu0 }
 0xe3c   :  { %4650 = vtanh.f32 %v2500_v16  ;;  %v2503_v20 = vadd.f32 %v3609_v14, %v2490_v17  ;;  %v2489_v21 = vmul.f32 %v3602_v15, %v2469_v18  ;;  %v3647_v15 = vld [vmem:[%s5971_s8 + $0x148] sm:$0xff]  ;;  %v3646_v17 = vld [vmem:[%s5971_s8 + $0x140] sm:$0xff] }
 0xe3e   :  { %v2502_v22 = vadd.f32 %v3608_v19, %v2489_v21  ;;  %4652 = vtanh.f32 %v2503_v20 }
 0xe40   :  { %4654 = vtanh.f32 %v2502_v22 }
 0xe43   :  { %v4645_v23 = vpop.eup %4644 }
 0xe44   :  { %v5682_v26 = vadd.f32 %v4645_v23, %v5482_v34 }
 0xe45   :  { %v4647_v24 = vpop.eup %4646 }
 0xe46   :  { %v5679_v25 = vadd.f32 %v4647_v24, %v5480_v33 }
 0xe47   :  { %v4649_v27 = vpop.eup %4648 }
 0xe48   :  { %4438 = vmatprep.mubr.msk.f32.mxu0 %vm329_vm2, %v5679_v25  ;;  %v5692_v30 = vadd.f32 %v4649_v27, %v5490_v36 }
 0xe49   :  { %v4651_v28 = vpop.eup %4650  ;;  %4439 = vmatmul.mubr.msk.f32.vlgmr.msra.gmra.mxu0 %vm329_vm2, %v5682_v26 }
 0xe4a   :  { %v5689_v29 = vadd.f32 %v4651_v28, %v5488_v35  ;;  %v3618_v35 = vld [vmem:[%s5969_s6 + $0x120] sm:$0xff] }
 0xe4b   :  { %v4653_v31 = vpop.eup %4652  ;;  %4459 = vmatprep.mubr.msk.f32.mxu1 %vm171_vm1, %v3618_v35 }
 0xe4c   :  { %4441 = vmatprep.mubr.msk.f32.mxu0 %vm329_vm2, %v5689_v29  ;;  %v5702_v32 = vadd.f32 %v4653_v31, %v5498_v38  ;;  %v3656_v31 = vld [vmem:[%s5969_s6 + $0x150] sm:$0xff] }
 0xe4d   :  { %v4655_v33 = vpop.eup %4654  ;;  %4442 = vmatmul.mubr.msk.f32.gmra.mxu0 %vm329_vm2, %v5692_v30 }
 0xe4e   :  { %v5699_v34 = vadd.f32 %v4655_v33, %v5496_v37 }
 0xe50   :  { %4444 = vmatprep.mubr.msk.f32.mxu0 %vm329_vm2, %v5699_v34 }
 0xe51   :  { %4445 = vmatmul.mubr.msk.f32.gmra.mxu0 %vm329_vm2, %v5702_v32 }
 0xe52   :  { %4505 = vmatprep.mubr.msk.f32.mxu0 %vm171_vm1, %v3656_v31 }
 0xf09   :  { %v4440_v36 = vpop.f32.mrf.mxu0 }
 0xf0b   :  { %v2616_v39 = vpop.f32.mrf.mxu0 }
 0xf0d   :  { %v4443_v40 = vpop.f32.mrf.mxu0 }
 0xf0f   :  { %v2626_v37 = vpop.f32.mrf.mxu0 }
 0xf11   :  { %v4446_v41 = vpop.f32.mrf.mxu0 }
 0xf12   :  { %4447 = vmatprep.subr.mxu1 %v4446_v41 }
 0xf13   :  { %v2636_v38 = vpop.f32.mrf.mxu0  ;;  %4448 = vmatpush3.msra.mxu1 %v4446_v41  ;;  %v3657_v41 = vld [vmem:[%s5969_s6 + $0x158] sm:$0xff] }
 0xf14   :  { %4449 = vmatprep.subr.mxu1 %v2636_v38 }
 0xf15   :  { %4450 = vmatpush3.msra.mxu1 %v2636_v38  ;;  %v3658_v38 = vld [vmem:[%s5969_s6 + $0x160] sm:$0xff] }
 0xf16   :  { %4451 = vmatprep.subr.mxu1 %v4443_v40 }
 0xf17   :  { %4452 = vmatpush3.msra.mxu1 %v4443_v40 }
 0xf18   :  { %4453 = vmatprep.subr.mxu1 %v2626_v37 }
 0xf19   :  { %4454 = vmatpush3.msra.mxu1 %v2626_v37 }
 0xf1a   :  { %4455 = vmatprep.subr.mxu1 %v4440_v36 }
 0xf1b   :  { %4456 = vmatpush3.msra.mxu1 %v4440_v36 }
 0xf1c   :  { %4457 = vmatprep.subr.mxu1 %v2616_v39 }
 0xf1d   :  { %4458 = vmatpush3.msra.mxu1 %v2616_v39 }
 0xf1e   :  { %4460 = vmatmul.mubr.msk.f32.vlgmr.msra.gmra.mxu1 %vm171_vm1, %v3619_v42  ;;  %4468 = vmatprep.subr.mxu1 %v3655_v47  ;;  %v3659_v42 = vld [vmem:[%s5969_s6 + $0x168] sm:$0xff] }
 0xf1f   :  { %4462 = vmatprep.mubr.msk.f32.mxu1 %vm171_vm1, %v3620_v43  ;;  %4469 = vmatpush3.msra.mxu1 %v3655_v47  ;;  %v3660_v43 = vld [vmem:[%s5969_s6 + $0x170] sm:$0xff]  ;;  %v3691_v47 = vld [vmem:[%s5972_s9 + $0x68] sm:$0xff] }
 0xf20   :  { %4470 = vmatprep.subr.mxu1 %v3654_v48 }
 0xf21   :  { %4471 = vmatpush3.msra.mxu1 %v3654_v48  ;;  %v3690_v48 = vld [vmem:[%s5972_s9 + $0x60] sm:$0xff] }
 0xf22   :  { %4463 = vmatmul.mubr.msk.f32.gmra.mxu1 %vm171_vm1, %v3621_v44  ;;  %4472 = vmatprep.subr.mxu1 %v3653_v49  ;;  %v3661_v44 = vld [vmem:[%s5969_s6 + $0x178] sm:$0xff] }
 0xf23   :  { %4465 = vmatprep.mubr.msk.f32.mxu1 %vm171_vm1, %v3622_v45  ;;  %4473 = vmatpush3.msra.mxu1 %v3653_v49  ;;  %v3693_v45 = vld [vmem:[%s5972_s9 + $0x78] sm:$0xff] }
 0xf24   :  { %4474 = vmatprep.subr.mxu1 %v3652_v50  ;;  %v3689_v49 = vld [vmem:[%s5972_s9 + $0x58] sm:$0xff] }
 0xf25   :  { %4475 = vmatpush3.msra.mxu1 %v3652_v50  ;;  %v3688_v50 = vld [vmem:[%s5972_s9 + $0x50] sm:$0xff] }
 0xf26   :  { %4466 = vmatmul.mubr.msk.f32.gmra.mxu1 %vm171_vm1, %v3623_v46  ;;  %4476 = vmatprep.subr.mxu1 %v3651_v51  ;;  %v3692_v46 = vld [vmem:[%s5972_s9 + $0x70] sm:$0xff] }
 0xf27   :  { %4477 = vmatpush3.msra.mxu1 %v3651_v51  ;;  %v3687_v51 = vld [vmem:[%s5972_s9 + $0x48] sm:$0xff] }
 0xf28   :  { %4478 = vmatprep.subr.mxu1 %v3650_v54 }
 0xf29   :  { %4479 = vmatpush3.msra.mxu1 %v3650_v54  ;;  %v3686_v54 = vld [vmem:[%s5972_s9 + $0x40] sm:$0xff] }
 0xf2a   :  { %4480 = vmatprep.subr.mxu1 %v3649_v55 }
 0xf2b   :  { %4481 = vmatpush3.msra.mxu1 %v3649_v55  ;;  %v3675_v55 = vld [vmem:[%s5970_s7 + $0x158] sm:$0xff] }
 0xf2c   :  { %4482 = vmatprep.subr.mxu1 %v3648_v58 }
 0xf2d   :  { %4483 = vmatpush3.msra.mxu1 %v3648_v58 }
 0xfde   :  { %v4461_v52 = vpop.f32.mrf.mxu1 }
 0xfdf   :  { %v2766_v56 = vmul.f32 %v4461_v52, %v3637_v60  ;;  %v3681_v60 = vld [vmem:[%s5971_s8 + $0x158] sm:$0xff]  ;;  %v3674_v52 = vld [vmem:[%s5970_s7 + $0x150] sm:$0xff] }
 0xfe0   :  { %v2729_v62 = vpop.f32.mrf.mxu1 }
 0xfe1   :  { %v2765_v3 = vmul.f32 %v3636_v53, %v2729_v62  ;;  %v2779_v0 = vadd.f32 %v3643_v57, %v2766_v56  ;;  %v3680_v57 = vld [vmem:[%s5971_s8 + $0x150] sm:$0xff]  ;;  %v3677_v62 = vld [vmem:[%s5970_s7 + $0x168] sm:$0xff] }
 0xfe2   :  { %v4464_v61 = vpop.f32.mrf.mxu1 }
 0xfe3   :  { %v2778_v4 = vadd.f32 %v3642_v63, %v2765_v3  ;;  %v2768_v1 = vmul.f32 %v4464_v61, %v3639_v2  ;;  %v3676_v61 = vld [vmem:[%s5970_s7 + $0x160] sm:$0xff] }
 0xfe4   :  { %v2739_v6 = vpop.f32.mrf.mxu1 }
 0xfe5   :  { %4656 = vtanh.f32 %v2778_v4  ;;  %v2767_v9 = vmul.f32 %v3638_v59, %v2739_v6  ;;  %v2781_v10 = vadd.f32 %v3645_v5, %v2768_v1  ;;  %v3682_v5 = vld [vmem:[%s5971_s8 + $0x160] sm:$0xff]  ;;  %v3679_v6 = vld [vmem:[%s5970_s7 + $0x178] sm:$0xff] }
 0xfe6   :  { %4658 = vtanh.f32 %v2779_v0  ;;  %v4467_v11 = vpop.f32.mrf.mxu1  ;;  %v3683_v0 = vld [vmem:[%s5971_s8 + $0x168] sm:$0xff] }
 0xfe7   :  { %v2780_v13 = vadd.f32 %v3644_v7, %v2767_v9  ;;  %v2770_v14 = vmul.f32 %v4467_v11, %v3641_v8  ;;  %v3678_v11 = vld [vmem:[%s5970_s7 + $0x170] sm:$0xff] }
 0xfe8   :  { %v2749_v16 = vpop.f32.mrf.mxu1 }
 0xfe9   :  { %4660 = vtanh.f32 %v2780_v13  ;;  %v2769_v18 = vmul.f32 %v3640_v12, %v2749_v16  ;;  %v2783_v19 = vadd.f32 %v3647_v15, %v2770_v14  ;;  %v3684_v15 = vld [vmem:[%s5971_s8 + $0x170] sm:$0xff] }
 0xfea   :  { %4662 = vtanh.f32 %v2781_v10  ;;  %v3685_v10 = vld [vmem:[%s5971_s8 + $0x178] sm:$0xff] }
 0xfeb   :  { %v2782_v20 = vadd.f32 %v3646_v17, %v2769_v18 }
 0xfed   :  { %4664 = vtanh.f32 %v2782_v20 }
 0xfee   :  { %4666 = vtanh.f32 %v2783_v19 }
 0xff2   :  { %v4657_v21 = vpop.eup %4656 }
 0xff3   :  { %v4659_v22 = vpop.eup %4658  ;;  %4484 = vmatprep.mubr.msk.f32.mxu1 %vm329_vm2, %v4657_v21 }
 0xff4   :  { %4485 = vmatmul.mubr.msk.f32.vlgmr.msra.gmra.mxu1 %vm329_vm2, %v4659_v22 }
 0xff6   :  { %v4661_v23 = vpop.eup %4660 }
 0xff7   :  { %v4663_v24 = vpop.eup %4662  ;;  %4487 = vmatprep.mubr.msk.f32.mxu1 %vm329_vm2, %v4661_v23 }
 0xff8   :  { %4488 = vmatmul.mubr.msk.f32.gmra.mxu1 %vm329_vm2, %v4663_v24 }
 0xffa   :  { %v4665_v27 = vpop.eup %4664 }
 0xffb   :  { %v4667_v28 = vpop.eup %4666  ;;  %4490 = vmatprep.mubr.msk.f32.mxu1 %vm329_vm2, %v4665_v27 }
 0xffc   :  { %4491 = vmatmul.mubr.msk.f32.gmra.mxu1 %vm329_vm2, %v4667_v28 }
0x10b4   :  { %v4486_v33 = vpop.f32.mrf.mxu1 }
0x10b6   :  { %v2890_v35 = vpop.f32.mrf.mxu1 }
0x10b8   :  { %v4489_v36 = vpop.f32.mrf.mxu1 }
0x10ba   :  { %v2900_v39 = vpop.f32.mrf.mxu1 }
0x10bc   :  { %v4492_v40 = vpop.f32.mrf.mxu1 }
0x10bd   :  { %4493 = vmatprep.subr.mxu0 %v4492_v40 }
0x10be   :  { %v2910_v37 = vpop.f32.mrf.mxu1  ;;  %4494 = vmatpush3.msra.mxu0 %v4492_v40 }
0x10bf   :  { %4495 = vmatprep.subr.mxu0 %v2910_v37 }
0x10c0   :  { %4496 = vmatpush3.msra.mxu0 %v2910_v37 }
0x10c1   :  { %4497 = vmatprep.subr.mxu0 %v4489_v36 }
0x10c2   :  { %4498 = vmatpush3.msra.mxu0 %v4489_v36 }
0x10c3   :  { %4499 = vmatprep.subr.mxu0 %v2900_v39 }
0x10c4   :  { %4500 = vmatpush3.msra.mxu0 %v2900_v39 }
0x10c5   :  { %4501 = vmatprep.subr.mxu0 %v4486_v33 }
0x10c6   :  { %4502 = vmatpush3.msra.mxu0 %v4486_v33 }
0x10c7   :  { %4503 = vmatprep.subr.mxu0 %v2890_v35 }
0x10c8   :  { %4504 = vmatpush3.msra.mxu0 %v2890_v35 }
0x10c9   :  { %4506 = vmatmul.mubr.msk.f32.vlgmr.msra.gmra.mxu0 %vm171_vm1, %v3657_v41  ;;  %4514 = vmatprep.subr.mxu0 %v3693_v45  ;;  %v3697_v41 = vld [vmem:[%s5973_s10 + $0x48] sm:$0xff] }
0x10ca   :  { %4508 = vmatprep.mubr.msk.f32.mxu0 %vm171_vm1, %v3658_v38  ;;  %4515 = vmatpush3.msra.mxu0 %v3693_v45  ;;  %v3698_v38 = vld [vmem:[%s5973_s10 + $0x50] sm:$0xff] }
0x10cb   :  { %4516 = vmatprep.subr.mxu0 %v3692_v46 }
0x10cc   :  { %4517 = vmatpush3.msra.mxu0 %v3692_v46 }
0x10cd   :  { %4509 = vmatmul.mubr.msk.f32.gmra.mxu0 %vm171_vm1, %v3659_v42  ;;  %4518 = vmatprep.subr.mxu0 %v3691_v47  ;;  %v3699_v42 = vld [vmem:[%s5973_s10 + $0x58] sm:$0xff] }
0x10ce   :  { %4511 = vmatprep.mubr.msk.f32.mxu0 %vm171_vm1, %v3660_v43  ;;  %4519 = vmatpush3.msra.mxu0 %v3691_v47  ;;  %v3707_v43 = vld [vmem:[%s5974_s11 + $0x1] ss:$0 sm:$0xff] }
0x10cf   :  { %4520 = vmatprep.subr.mxu0 %v3690_v48 }
0x10d0   :  { %4521 = vmatpush3.msra.mxu0 %v3690_v48  ;;  %v4687_v48 = vld [vmem:[%s5964_s0 + $0x30] sm:$0xff] }
0x10d1   :  { %4512 = vmatmul.mubr.msk.f32.gmra.mxu0 %vm171_vm1, %v3661_v44  ;;  %4522 = vmatprep.subr.mxu0 %v3689_v49  ;;  %v4686_v44 = vld [vmem:[%s5964_s0 + $0x38] sm:$0xff] }
0x10d2   :  { %4523 = vmatpush3.msra.mxu0 %v3689_v49  ;;  %v3321_v45 = vmul.f32 2.0, %v4686_v44  ;;  %v3320_v49 = vmul.f32 2.0, %v4687_v48 }
0x10d3   :  { %4524 = vmatprep.subr.mxu0 %v3688_v50 }
0x10d4   :  { %4525 = vmatpush3.msra.mxu0 %v3688_v50 }
0x10d5   :  { %4526 = vmatprep.subr.mxu0 %v3687_v51 }
0x10d6   :  { %4527 = vmatpush3.msra.mxu0 %v3687_v51 }
0x10d7   :  { %4528 = vmatprep.subr.mxu0 %v3686_v54 }
0x10d8   :  { %4529 = vmatpush3.msra.mxu0 %v3686_v54 }
0x1189   :  { %v4507_v58 = vpop.f32.mrf.mxu0 }
0x118a   :  { %v3040_v53 = vmul.f32 %v4507_v58, %v3675_v55  ;;  %v4688_v55 = vld [vmem:[%s5964_s0 + $0x48] sm:$0xff] }
0x118b   :  { %v3003_v56 = vpop.f32.mrf.mxu0  ;;  %v3323_v58 = vmul.f32 2.0, %v4688_v55 }
0x118c   :  { %v3053_v63 = vadd.f32 %v3681_v60, %v3040_v53  ;;  %v3039_v2 = vmul.f32 %v3674_v52, %v3003_v56  ;;  %v4689_v56 = vld [vmem:[%s5964_s0 + $0x40] sm:$0xff] }
0x118d   :  { %v4510_v3 = vpop.f32.mrf.mxu0 }
0x118e   :  { %v3052_v59 = vadd.f32 %v3680_v57, %v3039_v2  ;;  %v3042_v4 = vmul.f32 %v4510_v3, %v3677_v62  ;;  %4668 = vtanh.f32 %v3053_v63  ;;  %v3322_v57 = vmul.f32 2.0, %v4689_v56  ;;  %v4690_v3 = vld [vmem:[%s5964_s0 + $0x58] sm:$0xff] }
0x118f   :  { %v3013_v1 = vpop.f32.mrf.mxu0 }
0x1190   :  { %4670 = vtanh.f32 %v3052_v59  ;;  %v3055_v7 = vadd.f32 %v3683_v0, %v3042_v4  ;;  %v3041_v8 = vmul.f32 %v3676_v61, %v3013_v1  ;;  %v3325_v0 = vmul.f32 2.0, %v4690_v3  ;;  %v4691_v1 = vld [vmem:[%s5964_s0 + $0x50] sm:$0xff] }
0x1191   :  { %v4513_v9 = vpop.f32.mrf.mxu0 }
0x1192   :  { %v3054_v12 = vadd.f32 %v3682_v5, %v3041_v8  ;;  %v3044_v13 = vmul.f32 %v4513_v9, %v3679_v6  ;;  %4672 = vtanh.f32 %v3055_v7  ;;  %v3324_v5 = vmul.f32 2.0, %v4691_v1 }
0x1193   :  { %v3023_v14 = vpop.f32.mrf.mxu0 }
0x1194   :  { %4674 = vtanh.f32 %v3054_v12  ;;  %v3057_v16 = vadd.f32 %v3685_v10, %v3044_v13  ;;  %v3043_v17 = vmul.f32 %v3678_v11, %v3023_v14 }
0x1196   :  { %v3056_v18 = vadd.f32 %v3684_v15, %v3043_v17  ;;  %4676 = vtanh.f32 %v3057_v16 }
0x1198   :  { %4678 = vtanh.f32 %v3056_v18 }
0x119b   :  { %v4669_v19 = vpop.eup %4668 }
0x119c   :  { %v3065_v22 = vadd.f32 %v4669_v19, %v5682_v26 }
0x119d   :  { %v4671_v20 = vpop.eup %4670 }
0x119e   :  { %v3064_v21 = vadd.f32 %v4671_v20, %v5679_v25 }
0x119f   :  { %v4673_v23 = vpop.eup %4672 }
0x11a0   :  { %4530 = vmatprep.mubr.msk.f32.mxu0 %vm329_vm2, %v3064_v21  ;;  %v3067_v28 = vadd.f32 %v4673_v23, %v5692_v30 }
0x11a1   :  { %v4675_v24 = vpop.eup %4674  ;;  %4531 = vmatmul.mubr.msk.f32.vlgmr.msra.gmra.mxu0 %vm329_vm2, %v3065_v22 }
0x11a2   :  { %v3066_v27 = vadd.f32 %v4675_v24, %v5689_v29  ;;  %v3694_v29 = vld [vmem:[%s5973_s10 + $0x30] sm:$0xff] }
0x11a3   :  { %v4677_v31 = vpop.eup %4676  ;;  %4551 = vmatprep.mubr.msk.f32.mxu1 %vm171_vm1, %v3694_v29 }
0x11a4   :  { %4533 = vmatprep.mubr.msk.f32.mxu0 %vm329_vm2, %v3066_v27  ;;  %v3069_v26 = vadd.f32 %v4677_v31, %v5702_v32  ;;  %v3696_v32 = vld [vmem:[%s5973_s10 + $0x40] sm:$0xff] }
0x11a5   :  { %v4679_v33 = vpop.eup %4678  ;;  %4534 = vmatmul.mubr.msk.f32.gmra.mxu0 %vm329_vm2, %v3067_v28 }
0x11a6   :  { %v3068_v25 = vadd.f32 %v4679_v33, %v5699_v34  ;;  %v3695_v34 = vld [vmem:[%s5973_s10 + $0x38] sm:$0xff] }
0x11a8   :  { %4536 = vmatprep.mubr.msk.f32.mxu0 %vm329_vm2, %v3068_v25 }
0x11a9   :  { %4537 = vmatmul.mubr.msk.f32.gmra.mxu0 %vm329_vm2, %v3069_v26 }
0x1261   :  { %v4532_v30 = vpop.f32.mrf.mxu0 }
0x1263   :  { %v3170_v35 = vpop.f32.mrf.mxu0 }
0x1265   :  { %v4535_v36 = vpop.f32.mrf.mxu0 }
0x1267   :  { %v3180_v39 = vpop.f32.mrf.mxu0 }
0x1269   :  { %v4538_v40 = vpop.f32.mrf.mxu0 }
0x126a   :  { %4539 = vmatprep.subr.mxu1 %v4538_v40 }
0x126b   :  { %v3190_v37 = vpop.f32.mrf.mxu0  ;;  %4540 = vmatpush3.msra.mxu1 %v4538_v40 }
0x126c   :  { %4541 = vmatprep.subr.mxu1 %v3190_v37 }
0x126d   :  { %4542 = vmatpush3.msra.mxu1 %v3190_v37 }
0x126e   :  { %4543 = vmatprep.subr.mxu1 %v4535_v36 }
0x126f   :  { %4544 = vmatpush3.msra.mxu1 %v4535_v36 }
0x1270   :  { %4545 = vmatprep.subr.mxu1 %v3180_v39 }
0x1271   :  { %4546 = vmatpush3.msra.mxu1 %v3180_v39 }
0x1272   :  { %4547 = vmatprep.subr.mxu1 %v4532_v30 }
0x1273   :  { %4548 = vmatpush3.msra.mxu1 %v4532_v30 }
0x1274   :  { %4549 = vmatprep.subr.mxu1 %v3170_v35 }
0x1275   :  { %4550 = vmatpush3.msra.mxu1 %v3170_v35 }
0x1276   :  { %4552 = vmatmul.mubr.msk.f32.vlgmr.msra.gmra.mxu1 %vm171_vm1, %v3695_v34 }
0x1277   :  { %4554 = vmatprep.mubr.msk.f32.mxu1 %vm171_vm1, %v3696_v32 }
0x127a   :  { %4555 = vmatmul.mubr.msk.f32.gmra.mxu1 %vm171_vm1, %v3697_v41 }
0x127b   :  { %4557 = vmatprep.mubr.msk.f32.mxu1 %vm171_vm1, %v3698_v38 }
0x127e   :  { %4558 = vmatmul.mubr.msk.f32.gmra.mxu1 %vm171_vm1, %v3699_v42 }
0x1336   :  { %v4553_v46 = vpop.f32.mrf.mxu1 }
0x1337   :  { %v3297_v47 = vadd.f32 %v4553_v46, %v3707_v43 }
0x1338   :  { %v3291_v50 = vpop.f32.mrf.mxu1 }
0x1339   :  { %v3327_v51 = vadd.f32 %v3321_v45, %v3297_v47  ;;  %v3292_v54 = vadd.f32 %v3707_v43, %v3291_v50 }
0x133a   :  { %v4556_v60 = vpop.f32.mrf.mxu1 }
0x133b   :  { %3715 = vst.msk [vmem:[%s5975_s12 + $0x38] sm:$0xff] %vm57_vm0, %v3327_v51  ;;  %v3326_v52 = vadd.f32 %v3320_v49, %v3292_v54  ;;  %v3307_v53 = vadd.f32 %v4556_v60, %v3707_v43 }
0x133c   :  { %v3301_v62 = vpop.f32.mrf.mxu1 }
0x133d   :  { %3714 = vst.msk [vmem:[%s5975_s12 + $0x30] sm:$0xff] %vm57_vm0, %v3326_v52  ;;  %v3329_v63 = vadd.f32 %v3323_v58, %v3307_v53  ;;  %v3302_v2 = vadd.f32 %v3707_v43, %v3301_v62 }
0x133e   :  { %v4559_v61 = vpop.f32.mrf.mxu1 }
0x133f   :  { %3717 = vst.msk [vmem:[%s5975_s12 + $0x48] sm:$0xff] %vm57_vm0, %v3329_v63  ;;  %v3328_v59 = vadd.f32 %v3322_v57, %v3302_v2  ;;  %v3317_v4 = vadd.f32 %v4559_v61, %v3707_v43 }
0x1340   :  { %v3311_v6 = vpop.f32.mrf.mxu1 }
0x1341   :  { %3716 = vst.msk [vmem:[%s5975_s12 + $0x40] sm:$0xff] %vm57_vm0, %v3328_v59  ;;  %v3331_v7 = vadd.f32 %v3325_v0, %v3317_v4  ;;  %v3312_v8 = vadd.f32 %v3707_v43, %v3311_v6 }
0x1343   :  { %3719 = vst.msk [vmem:[%s5975_s12 + $0x58] sm:$0xff] %vm57_vm0, %v3331_v7  ;;  %v3330_v9 = vadd.f32 %v3324_v5, %v3312_v8 }
0x1345   :  { %3718 = vst.msk [vmem:[%s5975_s12 + $0x50] sm:$0xff] %vm57_vm0, %v3330_v9 }

</bundles_post_ra>
